<compile_context>
chip_gen: v6e
topology: v6e:2x2x1
jax: 0.10.0
libtpu: 0.0.40
codegen_flags: <defaults>
</compile_context>

<pallas_src>
import functools

import jax
import jax.numpy as jnp
import numpy as np
from jax import lax
from jax.experimental import pallas as pl
from jax.experimental.pallas import tpu as pltpu

BN_EPS = 1e-5


def _self_attn_kernel(x_ref,        # (1, C, N)  f32
                      wqkv_ref,     # (C + 2*C8p, C)  matmul dtype (f32/bf16)
                      bqkv_ref,     # (C + 2*C8p, 1)  f32
                      shift_ref,    # (C, 1) f32  folded mix-bias + BN shift
                      o_ref,        # (1, C, N)  f32
                      *, c, c8p, kv_tile, approx_recip):
    x = x_ref[0]                                     # (C, N) f32
    n = x.shape[-1]
    mm_dtype = wqkv_ref.dtype

    # Fused [value' | query | key] 1x1-conv: one MXU matmul, f32 accumulate,
    # a single broadcast bias add, then one cast pass to the matmul dtype.
    proj = jnp.dot(wqkv_ref[...], x.astype(mm_dtype),
                   preferred_element_type=jnp.float32) + bqkv_ref[...]
    proj_mm = proj.astype(mm_dtype)
    vp = proj_mm[:c, :]                 # (C,   N)  value proj with mix+BN folded in
    q = proj_mm[c:c + c8p, :]           # (C8p, N)  (zero-padded rows are inert)
    k = proj_mm[c + c8p:, :]            # (C8p, N)

    # Key-tiled online softmax over the key axis.  Energy tiles are computed
    # as k_tᵀ·q so the softmax reduction runs over sublanes, the value matmul
    # needs no transposed operand, and normalization is deferred to the end.
    num_kt = n // kv_tile
    m_i = l_i = acc = None
    for t in range(num_kt):             # trace-time unrolled (num_kt is small)
        k_t = k[:, t * kv_tile:(t + 1) * kv_tile]    # (C8p, tk)
        v_t = vp[:, t * kv_tile:(t + 1) * kv_tile]   # (C,   tk)
        e_t = lax.dot_general(k_t, q, (((0,), (0,)), ((), ())),
                              preferred_element_type=jnp.float32)   # (tk, N)
        e_max = jnp.max(e_t, axis=0, keepdims=True)                 # (1, N)
        if t == 0:
            m_i = e_max
            p_t = jnp.exp(e_t - m_i)                                # (tk, N)
            l_i = jnp.sum(p_t, axis=0, keepdims=True)               # (1, N)
            acc = lax.dot_general(v_t, p_t.astype(mm_dtype),
                                  (((1,), (0,)), ((), ())),
                                  preferred_element_type=jnp.float32)  # (C, N)
        else:
            m_new = jnp.maximum(m_i, e_max)
            alpha = jnp.exp(m_i - m_new)                            # (1, N)
            p_t = jnp.exp(e_t - m_new)
            l_i = alpha * l_i + jnp.sum(p_t, axis=0, keepdims=True)
            acc = alpha * acc + lax.dot_general(
                v_t, p_t.astype(mm_dtype), (((1,), (0,)), ((), ())),
                preferred_element_type=jnp.float32)
            m_i = m_new

    out = acc * pl.reciprocal(l_i, approx=approx_recip)             # (C, N)
    # mix-conv + eval-mode BN are folded into vp/shift: add-only epilogue.
    o_ref[0] = (out + shift_ref[...] + x).astype(o_ref.dtype)


def self_attn_pallas(x_nchw, params, *, use_bf16_matmul=True,
                     approx_recip=True, kv_tile=None):
    """Self_Attn forward. x_nchw: (B, C, W, H) f32; params in PyTorch layout."""
    B, C, W, H = x_nchw.shape
    N = W * H
    C8 = params["wq"].shape[0]
    mm_dtype = jnp.bfloat16 if use_bf16_matmul else jnp.float32
    hi = lax.Precision.HIGHEST

    # ---- host-side folding (all O(C^2) or smaller, traced once) -----------
    scale = params["bn_gamma"] / jnp.sqrt(params["bn_var"] + BN_EPS)    # (C,)
    # Softmax rows sum to 1, so:  bn(mix(v·attnᵀ)) = (diag(scale)·Wm·Wv)·x·attnᵀ
    #                                              + [scale·(Wm·bv + bm - mean) + beta]·1ᵀ
    w_vp = scale[:, None] * jnp.matmul(params["wm"], params["wv"], precision=hi)
    shift = (scale * (jnp.matmul(params["wm"], params["bv"], precision=hi)
                      + params["bm"] - params["bn_mean"]) + params["bn_beta"])

    # Pad the q/k channel counts up to a multiple of 16 with zero rows/biases
    # so the [v'|q|k] slices of the fused projection are sublane-tile aligned
    # (zero channels contribute exactly 0 to the energy -> lossless).
    C8p = ((C8 + 15) // 16) * 16

    def pad_rows(w, b):
        wp = jnp.zeros((C8p, C), w.dtype).at[:C8].set(w)
        bp = jnp.zeros((C8p,), b.dtype).at[:C8].set(b)
        return wp, bp

    wq_p, bq_p = pad_rows(params["wq"], params["bq"])
    wk_p, bk_p = pad_rows(params["wk"], params["bk"])

    w_fused = jnp.concatenate([w_vp, wq_p, wk_p], axis=0).astype(mm_dtype)  # (Ct, C)
    b_fused = jnp.concatenate(
        [jnp.zeros((C,), jnp.float32), bq_p, bk_p])[:, None].astype(jnp.float32)
    shift = shift[:, None].astype(jnp.float32)                              # (C, 1)
    Ct = C + 2 * C8p

    # ---- key-tile selection ------------------------------------------------
    if kv_tile is None:
        kv_tile = N
        if N > 1024:  # large spatial stages: bound the NxN slab (v7x = 64 MiB VMEM)
            for t in range(min(512, N - 1), 127, -1):
                if N % t == 0:
                    kv_tile = t
                    break
    if kv_tile <= 0 or N % kv_tile != 0:
        kv_tile = N

    # NCHW -> (B, C, N) is a pure reshape (same flattening as torch .view).
    x_bcn = x_nchw.reshape(B, C, N)

    kernel = functools.partial(_self_attn_kernel, c=C, c8p=C8p,
                               kv_tile=kv_tile, approx_recip=approx_recip)
    full2 = lambda shape: pl.BlockSpec(shape, lambda b: (0, 0))

    w_itemsize = 2 if use_bf16_matmul else 4
    flops = B * (2 * Ct * C * N + 2 * C8p * N * N + 2 * C * N * N)
    bytes_acc = 2 * B * C * N * 4 + Ct * C * w_itemsize + (Ct + C) * 4

    out_bcn = pl.pallas_call(
        kernel,
        out_shape=jax.ShapeDtypeStruct((B, C, N), jnp.float32),
        grid=(B,),
        in_specs=[
            pl.BlockSpec((1, C, N), lambda b: (b, 0, 0)),   # x
            full2((Ct, C)),                                 # fused [v'|q|k] weight
            full2((Ct, 1)),                                 # fused bias
            full2((C, 1)),                                  # folded BN/mix shift
        ],
        out_specs=pl.BlockSpec((1, C, N), lambda b: (b, 0, 0)),
        compiler_params=pltpu.CompilerParams(
            dimension_semantics=("parallel",),
            vmem_limit_bytes=48 * 1024 * 1024),             # headroom on v7x's 64 MiB
        cost_estimate=pl.CostEstimate(flops=flops,
                                      transcendentals=B * N * N,
                                      bytes_accessed=bytes_acc),
    )(x_bcn, w_fused, b_fused, shift)

    return out_bcn.reshape(B, C, W, H)


def make_params(key, C, *, nontrivial_bn=True):
    """Synthetic params in PyTorch layout: conv weight (out, in) (1x1 kernel
    squeezed), bias (out,).  Self_Attn.__init__ sets bn.weight = bn.bias = 0
    (making the block an identity map); nontrivial_bn=True randomizes the BN
    parameters so tests actually exercise the attention math."""
    C8 = C // 8
    ks = jax.random.split(key, 12)
    w = lambda k, co, ci: jax.random.normal(k, (co, ci), jnp.float32) / np.sqrt(ci)
    b = lambda k, co: 0.1 * jax.random.normal(k, (co,), jnp.float32)
    p = {
        "wq": w(ks[0], C8, C), "bq": b(ks[1], C8),
        "wk": w(ks[2], C8, C), "bk": b(ks[3], C8),
        "wv": w(ks[4], C, C),  "bv": b(ks[5], C),
        "wm": w(ks[6], C, C),  "bm": b(ks[7], C),
    }
    if nontrivial_bn:
        p.update(
            bn_gamma=0.5 + jax.random.uniform(ks[8], (C,), jnp.float32),
            bn_beta=0.1 * jax.random.normal(ks[9], (C,), jnp.float32),
            bn_mean=0.1 * jax.random.normal(ks[10], (C,), jnp.float32),
            bn_var=0.5 + jax.random.uniform(ks[11], (C,), jnp.float32),
        )
    else:  # literal Self_Attn.__init__ state (gamma=beta=0, stats (0, 1))
        p.update(bn_gamma=jnp.zeros((C,), jnp.float32),
                 bn_beta=jnp.zeros((C,), jnp.float32),
                 bn_mean=jnp.zeros((C,), jnp.float32),
                 bn_var=jnp.ones((C,), jnp.float32))
    return p


def self_attn_reference(x_nchw, params, *, use_bf16_matmul=False):
    """Pure-JAX port of the PyTorch forward (eval-mode BN), unfolded.  When
    use_bf16_matmul is set, matmul operands are rounded to bf16 with f32
    accumulation, mirroring the kernel's fast path."""
    B, C, W, H = x_nchw.shape
    N = W * H
    mmdt = jnp.bfloat16 if use_bf16_matmul else jnp.float32
    hi = lax.Precision.HIGHEST
    x = x_nchw.reshape(B, C, N)
    xm = x.astype(mmdt)

    def conv1x1(w_, b_):
        y = jnp.einsum("oc,bcn->bon", w_.astype(mmdt), xm,
                       precision=hi, preferred_element_type=jnp.float32)
        return y + b_[None, :, None]

    q = conv1x1(params["wq"], params["bq"])            # (B, C8, N)
    k = conv1x1(params["wk"], params["bk"])            # (B, C8, N)
    v = conv1x1(params["wv"], params["bv"])            # (B, C,  N)
    energy = jnp.einsum("bcn,bcm->bnm", q.astype(mmdt), k.astype(mmdt),
                        precision=hi, preferred_element_type=jnp.float32)
    attn = jax.nn.softmax(energy, axis=-1)
    out = jnp.einsum("bcm,bnm->bcn", v.astype(mmdt), attn.astype(mmdt),
                     precision=hi, preferred_element_type=jnp.float32)
    out = jnp.einsum("oc,bcn->bon", params["wm"].astype(mmdt), out.astype(mmdt),
                     precision=hi, preferred_element_type=jnp.float32)
    out = out + params["bm"][None, :, None]
    g, bt = params["bn_gamma"][None, :, None], params["bn_beta"][None, :, None]
    mu, var = params["bn_mean"][None, :, None], params["bn_var"][None, :, None]
    out = g * (out - mu) / jnp.sqrt(var + BN_EPS) + bt
    out = out + x
    return out.reshape(B, C, W, H)


if __name__ == "__main__":
    key = jax.random.PRNGKey(0)
    kx, kp = jax.random.split(key)

    # Small but TPU-friendly shapes: C must be a multiple of 8 (the module
    # uses in_dim // 8 query/key channels); W*H = 256 keeps the output block
    # lane-dense (multiple of 128) and lets the key-tiled path be exercised.
    B, C, W, H = 2, 64, 16, 16
    x = jax.random.normal(kx, (B, C, W, H), jnp.float32)
    # Non-trivial BN params so the attention branch is actually exercised
    # (the module's literal __init__ has bn.weight = bn.bias = 0, which makes
    # the block an identity and would hide any attention bug).
    params = make_params(kp, C, nontrivial_bn=True)

    run = jax.jit(self_attn_pallas,
                  static_argnames=("use_bf16_matmul", "approx_recip", "kv_tile"))

    # f32-operand path, exact reciprocal, single key tile.
    out_f32 = jax.block_until_ready(
        run(x, params, use_bf16_matmul=False, approx_recip=False))
    ref_f32 = self_attn_reference(x, params, use_bf16_matmul=False)
    np.testing.assert_allclose(np.asarray(out_f32), np.asarray(ref_f32),
                               atol=5e-3, rtol=5e-3)

    # Default fast path: bf16 MXU operands / f32 accumulation / approx recip.
    ref_bf16 = self_attn_reference(x, params, use_bf16_matmul=True)
    out_bf16 = jax.block_until_ready(run(x, params))
    np.testing.assert_allclose(np.asarray(out_bf16), np.asarray(ref_bf16),
                               atol=3e-2, rtol=3e-2)

    # Key-tiled online-softmax path (two key tiles at N=256), same tolerance.
    out_tiled = jax.block_until_ready(run(x, params, kv_tile=128))
    np.testing.assert_allclose(np.asarray(out_tiled), np.asarray(ref_bf16),
                               atol=3e-2, rtol=3e-2)

    print("KERNEL_OK")
</pallas_src>

<mosaic_0001>
module attributes {stable_mosaic.version = 11 : i64} {
  func.func @_self_attn_kernel(%arg0: i32, %arg1: memref<1x64x256xf32, #tpu.memory_space<vmem>>, %arg2: memref<96x64xf32, #tpu.memory_space<vmem>>, %arg3: memref<96x1xf32, #tpu.memory_space<vmem>>, %arg4: memref<64x1xf32, #tpu.memory_space<vmem>>, %arg5: memref<1x64x256xf32, #tpu.memory_space<vmem>>) attributes {dimension_semantics = [#tpu.dimension_semantics<parallel>], iteration_bounds = array<i64: 2>, scalar_prefetch = 0 : i64, scratch_operands = 0 : i64, tpu.core_type = #tpu.core_type<tc>, window_params = [{transform_indices = @transform_0, window_bounds = array<i64: 1, 64, 256>}, {pipeline_mode = #tpu.pipeline_mode<synchronous>, transform_indices = @transform_1, window_bounds = array<i64: 96, 64>}, {pipeline_mode = #tpu.pipeline_mode<synchronous>, transform_indices = @transform_2, window_bounds = array<i64: 96, 1>}, {pipeline_mode = #tpu.pipeline_mode<synchronous>, transform_indices = @transform_3, window_bounds = array<i64: 64, 1>}, {transform_indices = @transform_4, window_bounds = array<i64: 1, 64, 256>}]} {
    %c0 = arith.constant 0 : index
    %c0_0 = arith.constant 0 : index
    %c0_1 = arith.constant 0 : index
    %0 = vector.load %arg1[%c0, %c0_0, %c0_1] : memref<1x64x256xf32, #tpu.memory_space<vmem>>, vector<1x64x256xf32>
    %1 = vector.shape_cast %0 : vector<1x64x256xf32> to vector<64x256xf32>
    %c0_2 = arith.constant 0 : index
    %c0_3 = arith.constant 0 : index
    %2 = vector.load %arg2[%c0_2, %c0_3] : memref<96x64xf32, #tpu.memory_space<vmem>>, vector<96x64xf32>
    %cst = arith.constant dense<0.000000e+00> : vector<96x256xf32>
    %3 = tpu.matmul %2, %1, %cst {dimension_numbers = #tpu.dot_dimension_numbers<[1], [0], [0], [1], [0, 0, 1, 1], [], []>} : vector<96x64xf32>, vector<64x256xf32>, vector<96x256xf32> -> vector<96x256xf32>
    %c0_4 = arith.constant 0 : index
    %c0_5 = arith.constant 0 : index
    %4 = vector.load %arg3[%c0_4, %c0_5] : memref<96x1xf32, #tpu.memory_space<vmem>>, vector<96x1xf32>
    %5 = vector.broadcast %4 : vector<96x1xf32> to vector<96x256xf32>
    %6 = arith.addf %3, %5 : vector<96x256xf32>
    %7 = vector.extract_strided_slice %6 {offsets = [0, 0], sizes = [64, 256], strides = [1, 1]} : vector<96x256xf32> to vector<64x256xf32>
    %8 = vector.extract_strided_slice %6 {offsets = [64, 0], sizes = [16, 256], strides = [1, 1]} : vector<96x256xf32> to vector<16x256xf32>
    %9 = vector.extract_strided_slice %6 {offsets = [80, 0], sizes = [16, 256], strides = [1, 1]} : vector<96x256xf32> to vector<16x256xf32>
    %cst_6 = arith.constant dense<0.000000e+00> : vector<256x256xf32>
    %10 = tpu.matmul %9, %8, %cst_6 {dimension_numbers = #tpu.dot_dimension_numbers<[0], [0], [1], [1], [0, 1, 1, 1], [], []>} : vector<16x256xf32>, vector<16x256xf32>, vector<256x256xf32> -> vector<256x256xf32>
    %cst_7 = arith.constant dense<0xFF800000> : vector<256xf32>
    %11 = vector.multi_reduction <maximumf>, %10, %cst_7 [0] : vector<256x256xf32> to vector<256xf32>
    %12 = vector.shape_cast %11 : vector<256xf32> to vector<1x256xf32>
    %13 = vector.broadcast %12 : vector<1x256xf32> to vector<256x256xf32>
    %14 = arith.subf %10, %13 : vector<256x256xf32>
    %15 = math.exp %14 : vector<256x256xf32>
    %cst_8 = arith.constant dense<0.000000e+00> : vector<256xf32>
    %16 = vector.multi_reduction <add>, %15, %cst_8 [0] : vector<256x256xf32> to vector<256xf32>
    %17 = vector.shape_cast %16 : vector<256xf32> to vector<1x256xf32>
    %cst_9 = arith.constant dense<0.000000e+00> : vector<64x256xf32>
    %18 = tpu.matmul %7, %15, %cst_9 {dimension_numbers = #tpu.dot_dimension_numbers<[1], [0], [0], [1], [0, 0, 1, 1], [], []>} : vector<64x256xf32>, vector<256x256xf32>, vector<64x256xf32> -> vector<64x256xf32>
    %19 = tpu.reciprocal %17 : vector<1x256xf32> -> vector<1x256xf32>
    %20 = vector.broadcast %19 : vector<1x256xf32> to vector<64x256xf32>
    %21 = arith.mulf %18, %20 : vector<64x256xf32>
    %c0_10 = arith.constant 0 : index
    %c0_11 = arith.constant 0 : index
    %22 = vector.load %arg4[%c0_10, %c0_11] : memref<64x1xf32, #tpu.memory_space<vmem>>, vector<64x1xf32>
    %23 = vector.broadcast %22 : vector<64x1xf32> to vector<64x256xf32>
    %24 = arith.addf %21, %23 : vector<64x256xf32>
    %25 = arith.addf %24, %1 : vector<64x256xf32>
    %c0_12 = arith.constant 0 : index
    %c0_13 = arith.constant 0 : index
    %c0_14 = arith.constant 0 : index
    %26 = vector.load %arg5[%c0_12, %c0_13, %c0_14] : memref<1x64x256xf32, #tpu.memory_space<vmem>>, vector<1x64x256xf32>
    %27 = vector.shape_cast %26 : vector<1x64x256xf32> to vector<64x256xf32>
    %28 = vector.shape_cast %25 : vector<64x256xf32> to vector<1x64x256xf32>
    tpu.vector_store %arg5[%c0_12, %c0_13, %c0_14], %28 {strides = array<i32>} : memref<1x64x256xf32, #tpu.memory_space<vmem>>, vector<1x64x256xf32>,
    return
  }
  func.func @transform_0(%arg0: i32) -> (i32, i32, i32) {
    %c0_i32 = arith.constant 0 : i32
    %c0_i32_0 = arith.constant 0 : i32
    %c0_i32_1 = arith.constant 0 : i32
    return %arg0, %c0_i32, %c0_i32_0 : i32, i32, i32
  }
  func.func @transform_1(%arg0: i32) -> (i32, i32) {
    %c0_i32 = arith.constant 0 : i32
    %c0_i32_0 = arith.constant 0 : i32
    %c0_i32_1 = arith.constant 0 : i32
    return %c0_i32, %c0_i32_0 : i32, i32
  }
  func.func @transform_2(%arg0: i32) -> (i32, i32) {
    %c0_i32 = arith.constant 0 : i32
    %c0_i32_0 = arith.constant 0 : i32
    %c0_i32_1 = arith.constant 0 : i32
    return %c0_i32, %c0_i32_0 : i32, i32
  }
  func.func @transform_3(%arg0: i32) -> (i32, i32) {
    %c0_i32 = arith.constant 0 : i32
    %c0_i32_0 = arith.constant 0 : i32
    %c0_i32_1 = arith.constant 0 : i32
    return %c0_i32, %c0_i32_0 : i32, i32
  }
  func.func @transform_4(%arg0: i32) -> (i32, i32, i32) {
    %c0_i32 = arith.constant 0 : i32
    %c0_i32_0 = arith.constant 0 : i32
    %c0_i32_1 = arith.constant 0 : i32
    return %arg0, %c0_i32, %c0_i32_0 : i32, i32, i32
  }
}

</mosaic_0001>

<bundles_post_ra>
// kernel: self_attn_pallas.1
= control target key start
LH: loop header
LB: loop body
LE: loop exit
PB: predicated region body
PF: predicated region fallthrough
CT: control target
= control target key end

     0   :  { %s1764_s15 = smov 0   ;;  %s2608_s0 = inlined_call_operand.vmem [shape: f32[2,64,256], index: 0, kind: input, shape index: {}]   ;;  %s2609_s1 = inlined_call_operand.vmem [shape: f32[96,64], index: 1, kind: input, shape index: {}]   ;;  %s2610_s2 = inlined_call_operand.vmem [shape: f32[96,1], index: 2, kind: input, shape index: {}]   ;;  %s2611_s3 = inlined_call_operand.vmem [shape: f32[64,1], index: 3, kind: input, shape index: {}]   ;;  %s2612_s4 = inlined_call_operand.vmem [shape: f32[2,64,256], index: 4, kind: output, shape index: {}]  }
   0x1 LB: > { %s1512_s16 = sadd.s32 4294967295, %s1735_s15   ;;  %p1516_p0 = scmp.ge.s32.totalorder %s1735_s15, 1  ;;  %s1735_s15 = sphi %s1764_s15, %s14_s15  }
   0x2   : > { %p162_p1 = scmp.lt.s32.totalorder %s1735_s15, 3 }
   0x4   : > { %p163_p2 = pnand %p1516_p0, %p162_p1 }
   0x6   : > { %166 = sbr.rel (%p163_p2) target bundleno = 1082 (0x43a), region = 36 }
   0xb   : > { %p188_p3 = scmp.lt.s32.totalorder %s1512_s16, 1  ;;  %v1737_v0 = vmov 0.0   ;;  %v1738_v1 = vmov 0   ;;  %v235_v2 = vld [vmem:[%s2610_s2 + $0x48] sm:$0xff]  ;;  %v236_v3 = vld [vmem:[%s2610_s2 + $0x50] sm:$0xff]  ;;  %v234_v4 = vld [vmem:[%s2610_s2 + $0x40] sm:$0xff] }
   0xc   : > { %399 = vmatprep.mubr.f32.mxu0 %v1737_v0  ;;  %697 = vmatprep.mubr.f32.mxu1 %v1737_v0  ;;  %v237_v9 = vld [vmem:[%s2610_s2 + $0x58] sm:$0xff]  ;;  %v214_v22 = vld [vmem:[%s2609_s1] sm:$0xff]  ;;  %vm298_vm0 = vcmask 523264   ;;  %v215_v23 = vld [vmem:[%s2609_s1 + $0x8] sm:$0xff]  ;;  %vm536_vm1 = vcmask 130048  }
   0xd   : > { %s2707_s16 = smov (!%p188_p3, %s1512_s16), 1  ;;  %1580 = vset.pattern.permute.xlu1 %v1738_v1  ;;  %1579 = vset.pattern.permute.xlu0 %v1738_v1  ;;  %v216_v24 = vld [vmem:[%s2609_s1 + $0x10] sm:$0xff]  ;;  %v217_v25 = vld [vmem:[%s2609_s1 + $0x18] sm:$0xff]  ;;  %v218_v26 = vld [vmem:[%s2609_s1 + $0x20] sm:$0xff] }
   0xe   : > { %s1567_s17 = sshll.u32 %s2707_s16, 7  ;;  %285 = vperm.xlu1 %1580, %v235_v2   ;;  %290 = vperm.xlu0 %1579, %v236_v3   ;;  %v219_v27 = vld [vmem:[%s2609_s1 + $0x28] sm:$0xff]  ;;  %v220_v28 = vld [vmem:[%s2609_s1 + $0x30] sm:$0xff]  ;;  %v221_v29 = vld [vmem:[%s2609_s1 + $0x38] sm:$0xff] }
   0xf   : > { %s1788_s24 = scalar_lea.vmem %s2608_s0, %s1567_s17  ;;  %v222_v30 = vld [vmem:[%s2609_s1 + $0x40] sm:$0xff]  ;;  %v223_v31 = vld [vmem:[%s2609_s1 + $0x48] sm:$0xff]  ;;  %v224_v32 = vld [vmem:[%s2609_s1 + $0x50] sm:$0xff]  ;;  %s2557_s20 = scalar_lea.vmem %s2612_s4, %s1567_s17 }
  0x10   : > { %v213_v5 = vld [vmem:[%s1788_s24 + $0x78] sm:$0xff]  ;;  %v212_v6 = vld [vmem:[%s1788_s24 + $0x70] sm:$0xff]  ;;  %v211_v7 = vld [vmem:[%s1788_s24 + $0x68] sm:$0xff] }
  0x11   : > { %351 = vmatprep.subr.mxu0 %v213_v5  ;;  %v210_v8 = vld [vmem:[%s1788_s24 + $0x60] sm:$0xff]  ;;  %v209_v10 = vld [vmem:[%s1788_s24 + $0x58] sm:$0xff]  ;;  %v208_v11 = vld [vmem:[%s1788_s24 + $0x50] sm:$0xff] }
  0x12   : > { %352 = vmatpush1.msra.mxu0 %v212_v6  ;;  %280 = vperm.xlu1 %1580, %v234_v4   ;;  %v207_v12 = vld [vmem:[%s1788_s24 + $0x48] sm:$0xff]  ;;  %v206_v13 = vld [vmem:[%s1788_s24 + $0x40] sm:$0xff]  ;;  %v205_v14 = vld [vmem:[%s1788_s24 + $0x38] sm:$0xff] }
  0x13   : > { %353 = vmatprep.subr.mxu0 %v211_v7  ;;  %295 = vperm.xlu0 %1579, %v237_v9   ;;  %v204_v15 = vld [vmem:[%s1788_s24 + $0x30] sm:$0xff]  ;;  %v203_v16 = vld [vmem:[%s1788_s24 + $0x28] sm:$0xff]  ;;  %v202_v17 = vld [vmem:[%s1788_s24 + $0x20] sm:$0xff] }
  0x14   : > { %354 = vmatpush1.msra.mxu0 %v210_v8  ;;  %v201_v18 = vld [vmem:[%s1788_s24 + $0x18] sm:$0xff]  ;;  %v200_v19 = vld [vmem:[%s1788_s24 + $0x10] sm:$0xff]  ;;  %v199_v20 = vld [vmem:[%s1788_s24 + $0x8] sm:$0xff] }
  0x15   : > { %355 = vmatprep.subr.mxu0 %v209_v10  ;;  %v198_v21 = vld [vmem:[%s1788_s24] sm:$0xff]  ;;  %v225_v33 = vld [vmem:[%s2609_s1 + $0x58] sm:$0xff]  ;;  %v227_v7 = vld [vmem:[%s2610_s2 + $0x8] sm:$0xff] }
  0x16   : > { %356 = vmatpush1.msra.mxu0 %v208_v11  ;;  %v229_v8 = vld [vmem:[%s2610_s2 + $0x18] sm:$0xff]  ;;  %v231_v9 = vld [vmem:[%s2610_s2 + $0x28] sm:$0xff]  ;;  %v226_v10 = vld [vmem:[%s2610_s2] sm:$0xff] }
  0x17   : > { %357 = vmatprep.subr.mxu0 %v207_v12  ;;  %v233_v11 = vld [vmem:[%s2610_s2 + $0x38] sm:$0xff]  ;;  %v228_v12 = vld [vmem:[%s2610_s2 + $0x10] sm:$0xff] }
  0x18   : > { %358 = vmatpush1.msra.mxu0 %v206_v13  ;;  %v1362_v13 = vld [vmem:[%s2611_s3 + $0x8] sm:$0xff] }
  0x19   : > { %359 = vmatprep.subr.mxu0 %v205_v14  ;;  %v230_v14 = vld [vmem:[%s2610_s2 + $0x20] sm:$0xff] }
  0x1a   : > { %360 = vmatpush1.msra.mxu0 %v204_v15  ;;  %v1364_v15 = vld [vmem:[%s2611_s3 + $0x18] sm:$0xff] }
  0x1b   : > { %361 = vmatprep.subr.mxu0 %v203_v16  ;;  %v232_v16 = vld [vmem:[%s2610_s2 + $0x30] sm:$0xff] }
  0x1c   : > { %362 = vmatpush1.msra.mxu0 %v202_v17  ;;  %v1366_v17 = vld [vmem:[%s2611_s3 + $0x28] sm:$0xff] }
  0x1d   : > { %363 = vmatprep.subr.mxu0 %v201_v18  ;;  %v1361_v18 = vld [vmem:[%s2611_s3] sm:$0xff] }
  0x1e   : > { %364 = vmatpush1.msra.mxu0 %v200_v19  ;;  %v1368_v19 = vld [vmem:[%s2611_s3 + $0x38] sm:$0xff] }
  0x1f   : > { %365 = vmatprep.subr.mxu0 %v199_v20  ;;  %v1363_v20 = vld [vmem:[%s2611_s3 + $0x10] sm:$0xff] }
  0x20   : > { %366 = vmatpush1.msra.mxu0 %v198_v21  ;;  %v1365_v21 = vld [vmem:[%s2611_s3 + $0x20] sm:$0xff] }
  0x21   : > { %1521 = vmatmul.mubr.msk.f32.vlgmr.msra.gmra.mxu0 %vm298_vm0, %v214_v22 }
  0x22   : > { %405 = vmatprep.mubr.f32.mxu0 %v1737_v0 }
  0x25   : > { %1522 = vmatmul.mubr.msk.f32.gmra.mxu0 %vm298_vm0, %v215_v23  ;;  %v1367_v23 = vld [vmem:[%s2611_s3 + $0x30] sm:$0xff] }
  0x26   : > { %411 = vmatprep.mubr.f32.mxu0 %v1737_v0 }
  0x29   : > { %1523 = vmatmul.mubr.msk.f32.gmra.mxu0 %vm298_vm0, %v216_v24 }
  0x2a   : > { %417 = vmatprep.mubr.f32.mxu0 %v1737_v0 }
  0x2d   : > { %1524 = vmatmul.mubr.msk.f32.gmra.mxu0 %vm298_vm0, %v217_v25 }
  0x2e   : > { %423 = vmatprep.mubr.f32.mxu0 %v1737_v0 }
  0x31   : > { %1525 = vmatmul.mubr.msk.f32.gmra.mxu0 %vm298_vm0, %v218_v26 }
  0x32   : > { %429 = vmatprep.mubr.f32.mxu0 %v1737_v0 }
  0x35   : > { %1526 = vmatmul.mubr.msk.f32.gmra.mxu0 %vm298_vm0, %v219_v27 }
  0x36   : > { %435 = vmatprep.mubr.f32.mxu0 %v1737_v0 }
  0x39   : > { %1527 = vmatmul.mubr.msk.f32.gmra.mxu0 %vm298_vm0, %v220_v28 }
  0x3a   : > { %441 = vmatprep.mubr.f32.mxu0 %v1737_v0 }
  0x3d   : > { %1528 = vmatmul.mubr.msk.f32.gmra.mxu0 %vm298_vm0, %v221_v29 }
  0x3e   : > { %447 = vmatprep.mubr.f32.mxu0 %v1737_v0 }
  0x41   : > { %1529 = vmatmul.mubr.msk.f32.gmra.mxu0 %vm298_vm0, %v222_v30 }
  0x42   : > { %453 = vmatprep.mubr.f32.mxu0 %v1737_v0 }
  0x45   : > { %1530 = vmatmul.mubr.msk.f32.gmra.mxu0 %vm298_vm0, %v223_v31 }
  0x46   : > { %459 = vmatprep.mubr.f32.mxu0 %v1737_v0 }
  0x49   : > { %1531 = vmatmul.mubr.msk.f32.gmra.mxu0 %vm298_vm0, %v224_v32 }
  0x4a   : > { %465 = vmatprep.mubr.f32.mxu0 %v1737_v0 }
  0x4d   : > { %1532 = vmatmul.mubr.msk.f32.gmra.mxu0 %vm298_vm0, %v225_v33 }
  0x89   : > { %v286_v51 = vpop.permute.xlu1 %285  ;;  %v291_v54 = vpop.permute.xlu0 %290 }
  0x8d   : > { %v281_v56 = vpop.permute.xlu1 %280 }
  0x8e   : > { %v296_v2 = vpop.permute.xlu0 %295 }
  0xe1   : > { %v1871_v34 = vpop.f32.mrf.mxu0 }
  0xe2   : > { %2634 = vst [vmem:[#allocation2_spill] sm:$0xff] %v1871_v34 }
  0xe3   : > { %v1873_v35 = vpop.f32.mrf.mxu0 }
  0xe5   : > { %v1875_v36 = vpop.f32.mrf.mxu0 }
  0xe6   : > { %2635 = vst [vmem:[#allocation3_spill] sm:$0xff] %v1875_v36 }
  0xe7   : > { %v1877_v37 = vpop.f32.mrf.mxu0 }
  0xe8   : > { %2636 = vst [vmem:[#allocation4_spill] sm:$0xff] %v1877_v37 }
  0xe9   : > { %v1879_v38 = vpop.f32.mrf.mxu0 }
  0xea   : > { %2637 = vst [vmem:[#allocation5_spill] sm:$0xff] %v1879_v38 }
  0xeb   : > { %v1881_v39 = vpop.f32.mrf.mxu0 }
  0xec   : > { %2638 = vst [vmem:[#allocation6_spill] sm:$0xff] %v1881_v39 }
  0xed   : > { %v1883_v40 = vpop.f32.mrf.mxu0 }
  0xee   : > { %2639 = vst [vmem:[#allocation7_spill] sm:$0xff] %v1883_v40 }
  0xef   : > { %v1885_v41 = vpop.f32.mrf.mxu0 }
  0xf0   : > { %2640 = vst [vmem:[#allocation8_spill] sm:$0xff] %v1885_v41 }
  0xf1   : > { %v1887_v42 = vpop.f32.mrf.mxu0 }
  0xf2   : > { %2641 = vst [vmem:[#allocation9_spill] sm:$0xff] %v1887_v42 }
  0xf3   : > { %v1889_v43 = vpop.f32.mrf.mxu0 }
  0xf4   : > { %2642 = vst [vmem:[#allocation10_spill] sm:$0xff] %v1889_v43 }
  0xf5   : > { %v1891_v44 = vpop.f32.mrf.mxu0 }
  0xf6   : > { %2643 = vst [vmem:[#allocation11_spill] sm:$0xff] %v1891_v44 }
  0xf7   : > { %v1893_v45 = vpop.f32.mrf.mxu0 }
  0xf8   : > { %2644 = vst [vmem:[#allocation12_spill] sm:$0xff] %v1893_v45 }
  0xf9   : > { %v1895_v46 = vpop.f32.mrf.mxu0 }
  0xfa   : > { %2645 = vst [vmem:[#allocation13_spill] sm:$0xff] %v1895_v46 }
  0xfb   : > { %v1897_v47 = vpop.f32.mrf.mxu0 }
  0xfc   : > { %2646 = vst [vmem:[#allocation14_spill] sm:$0xff] %v1897_v47 }
  0xfd   : > { %v1899_v48 = vpop.f32.mrf.mxu0 }
  0xfe   : > { %2647 = vst [vmem:[#allocation15_spill] sm:$0xff] %v1899_v48 }
  0xff   : > { %v1901_v49 = vpop.f32.mrf.mxu0 }
 0x100   : > { %2648 = vst [vmem:[#allocation16_spill] sm:$0xff] %v1901_v49 }
 0x101   : > { %v449_v50 = vpop.f32.mrf.mxu0 }
 0x102   : > { %v450_v62 = vadd.f32 %v449_v50, %v281_v56 }
 0x103   : > { %v451_v52 = vpop.f32.mrf.mxu0 }
 0x104   : > { %v452_v60 = vadd.f32 %v451_v52, %v281_v56 }
 0x105   : > { %v455_v53 = vpop.f32.mrf.mxu0 }
 0x106   : > { %v456_v58 = vadd.f32 %v455_v53, %v286_v51 }
 0x107   : > { %v457_v55 = vpop.f32.mrf.mxu0 }
 0x108   : > { %v458_v57 = vadd.f32 %v457_v55, %v286_v51 }
 0x109   : > { %v461_v59 = vpop.f32.mrf.mxu0 }
 0x10a   : > { %v462_v61 = vadd.f32 %v461_v59, %v291_v54  ;;  %661 = vmatprep.subr.mxu1 %v458_v57 }
 0x10b   : > { %v463_v63 = vpop.f32.mrf.mxu0  ;;  %662 = vmatpush1.msra.mxu1 %v456_v58 }
 0x10c   : > { %v464_v1 = vadd.f32 %v463_v63, %v291_v54  ;;  %472 = vxpose.xlu0.b32.start [1/2] (short) %v462_v61, 128  ;;  %663 = vmatprep.subr.mxu1 %v452_v60 }
 0x10d   : > { %v467_v3 = vpop.f32.mrf.mxu0  ;;  %664 = vmatpush1.msra.mxu1 %v450_v62 }
 0x10e   : > { %v468_v4 = vadd.f32 %v467_v3, %v296_v2  ;;  %504 = vxpose.xlu1.b32.start [1/2] (short) %v464_v1, 128 }
 0x10f   : > { %v469_v5 = vpop.f32.mrf.mxu0 }
 0x110   : > { %v470_v6 = vadd.f32 %v469_v5, %v296_v2  ;;  %473 = vxpose.xlu0.b32.end [2/2] (short) %v468_v4, 128 }
 0x112   : > { %505 = vxpose.xlu1.b32.end [2/2] (short) %v470_v6, 128 }
 0x168   : > { %245 = vperm.xlu1 %1580, %v227_v7  }
 0x16c   : > { %255 = vperm.xlu1 %1580, %v229_v8  }
 0x170   : > { %265 = vperm.xlu1 %1580, %v231_v9  }
 0x171   : > { %240 = vperm.xlu0 %1579, %v226_v10  }
 0x174   : > { %275 = vperm.xlu1 %1580, %v233_v11  }
 0x175   : > { %250 = vperm.xlu0 %1579, %v228_v12  }
 0x178   : > { %1376 = vperm.xlu1 %1580, %v1362_v13  }
 0x179   : > { %260 = vperm.xlu0 %1579, %v230_v14  }
 0x17c   : > { %1386 = vperm.xlu1 %1580, %v1364_v15  }
 0x17d   : > { %270 = vperm.xlu0 %1579, %v232_v16  }
 0x180   : > { %1396 = vperm.xlu1 %1580, %v1366_v17  }
 0x181   : > { %1371 = vperm.xlu0 %1579, %v1361_v18  }
 0x184   : > { %1406 = vperm.xlu1 %1580, %v1368_v19  }
 0x185   : > { %1381 = vperm.xlu0 %1579, %v1363_v20  }
 0x188   : > { %v488_v22 = vpop.trf.xlu0 }
 0x189   : > { %1391 = vperm.xlu0 %1579, %v1365_v21   ;;  %1533 = vmatmul.mubr.msk.f32.vlgmr.msra.gmra.mxu1 %vm536_vm1, %v488_v22 }
 0x18a   : > { %703 = vmatprep.mubr.f32.mxu1 %v1737_v0  ;;  %v520_v32 = vpop.trf.xlu1 }
 0x18c   : > { %v489_v24 = vpop.trf.xlu0 }
 0x18d   : > { %1401 = vperm.xlu0 %1579, %v1367_v23   ;;  %1534 = vmatmul.mubr.msk.f32.gmra.mxu1 %vm536_vm1, %v489_v24 }
 0x18e   : > { %709 = vmatprep.mubr.f32.mxu1 %v1737_v0  ;;  %v521_v50 = vpop.trf.xlu1 }
 0x190   : > { %v490_v25 = vpop.trf.xlu0 }
 0x191   : > { %1535 = vmatmul.mubr.msk.f32.gmra.mxu1 %vm536_vm1, %v490_v25 }
 0x192   : > { %715 = vmatprep.mubr.f32.mxu1 %v1737_v0  ;;  %v522_v53 = vpop.trf.xlu1 }
 0x194   : > { %v491_v26 = vpop.trf.xlu0 }
 0x195   : > { %1536 = vmatmul.mubr.msk.f32.gmra.mxu1 %vm536_vm1, %v491_v26 }
 0x196   : > { %721 = vmatprep.mubr.f32.mxu1 %v1737_v0  ;;  %v523_v55 = vpop.trf.xlu1 }
 0x198   : > { %v492_v27 = vpop.trf.xlu0 }
 0x199   : > { %1537 = vmatmul.mubr.msk.f32.gmra.mxu1 %vm536_vm1, %v492_v27 }
 0x19a   : > { %727 = vmatprep.mubr.f32.mxu1 %v1737_v0  ;;  %v524_v58 = vpop.trf.xlu1 }
 0x19c   : > { %v493_v28 = vpop.trf.xlu0 }
 0x19d   : > { %1538 = vmatmul.mubr.msk.f32.gmra.mxu1 %vm536_vm1, %v493_v28 }
 0x19e   : > { %733 = vmatprep.mubr.f32.mxu1 %v1737_v0  ;;  %v525_v60 = vpop.trf.xlu1 }
 0x1a0   : > { %v494_v29 = vpop.trf.xlu0 }
 0x1a1   : > { %1539 = vmatmul.mubr.msk.f32.gmra.mxu1 %vm536_vm1, %v494_v29 }
 0x1a2   : > { %739 = vmatprep.mubr.f32.mxu1 %v1737_v0  ;;  %v526_v61 = vpop.trf.xlu1 }
 0x1a4   : > { %v495_v30 = vpop.trf.xlu0 }
 0x1a5   : > { %1540 = vmatmul.mubr.msk.f32.gmra.mxu1 %vm536_vm1, %v495_v30 }
 0x1a6   : > { %745 = vmatprep.mubr.f32.mxu1 %v1737_v0  ;;  %v527_v62 = vpop.trf.xlu1 }
 0x1a8   : > { %v496_v31 = vpop.trf.xlu0 }
 0x1a9   : > { %1541 = vmatmul.mubr.msk.f32.gmra.mxu1 %vm536_vm1, %v496_v31 }
 0x1aa   : > { %751 = vmatprep.mubr.f32.mxu1 %v1737_v0  ;;  %v528_v63 = vpop.trf.xlu1 }
 0x1ac   : > { %v497_v33 = vpop.trf.xlu0 }
 0x1ad   : > { %1542 = vmatmul.mubr.msk.f32.gmra.mxu1 %vm536_vm1, %v497_v33 }
 0x1ae   : > { %757 = vmatprep.mubr.f32.mxu1 %v1737_v0  ;;  %v529_v1 = vpop.trf.xlu1 }
 0x1b0   : > { %v498_v51 = vpop.trf.xlu0 }
 0x1b1   : > { %1543 = vmatmul.mubr.msk.f32.gmra.mxu1 %vm536_vm1, %v498_v51 }
 0x1b2   : > { %763 = vmatprep.mubr.f32.mxu1 %v1737_v0  ;;  %v530_v2 = vpop.trf.xlu1 }
 0x1b4   : > { %v499_v52 = vpop.trf.xlu0 }
 0x1b5   : > { %1544 = vmatmul.mubr.msk.f32.gmra.mxu1 %vm536_vm1, %v499_v52 }
 0x1b6   : > { %769 = vmatprep.mubr.f32.mxu1 %v1737_v0  ;;  %v531_v3 = vpop.trf.xlu1 }
 0x1b8   : > { %v500_v54 = vpop.trf.xlu0 }
 0x1b9   : > { %1545 = vmatmul.mubr.msk.f32.gmra.mxu1 %vm536_vm1, %v500_v54 }
 0x1ba   : > { %775 = vmatprep.mubr.f32.mxu1 %v1737_v0  ;;  %v532_v6 = vpop.trf.xlu1 }
 0x1bc   : > { %v501_v56 = vpop.trf.xlu0 }
 0x1bd   : > { %1546 = vmatmul.mubr.msk.f32.gmra.mxu1 %vm536_vm1, %v501_v56 }
 0x1be   : > { %781 = vmatprep.mubr.f32.mxu1 %v1737_v0  ;;  %v533_v7 = vpop.trf.xlu1 }
 0x1c0   : > { %v502_v57 = vpop.trf.xlu0 }
 0x1c1   : > { %1547 = vmatmul.mubr.msk.f32.gmra.mxu1 %vm536_vm1, %v502_v57 }
 0x1c2   : > { %787 = vmatprep.mubr.f32.mxu1 %v1737_v0 }
 0x1c4   : > { %v503_v59 = vpop.trf.xlu0 }
 0x1c5   : > { %1548 = vmatmul.mubr.msk.f32.gmra.mxu1 %vm536_vm1, %v503_v59 }
 0x1c6   : > { %793 = vmatprep.mubr.f32.mxu1 %v1737_v0 }
 0x1c9   : > { %1549 = vmatmul.mubr.msk.f32.gmra.mxu1 %vm536_vm1, %v520_v32 }
 0x1ca   : > { %799 = vmatprep.mubr.f32.mxu1 %v1737_v0 }
 0x1cd   : > { %1550 = vmatmul.mubr.msk.f32.gmra.mxu1 %vm536_vm1, %v521_v50 }
 0x1ce   : > { %805 = vmatprep.mubr.f32.mxu1 %v1737_v0 }
 0x1d1   : > { %1551 = vmatmul.mubr.msk.f32.gmra.mxu1 %vm536_vm1, %v522_v53 }
 0x1d2   : > { %811 = vmatprep.mubr.f32.mxu1 %v1737_v0 }
 0x1d5   : > { %1552 = vmatmul.mubr.msk.f32.gmra.mxu1 %vm536_vm1, %v523_v55 }
 0x1d6   : > { %817 = vmatprep.mubr.f32.mxu1 %v1737_v0 }
 0x1d9   : > { %1553 = vmatmul.mubr.msk.f32.gmra.mxu1 %vm536_vm1, %v524_v58 }
 0x1da   : > { %823 = vmatprep.mubr.f32.mxu1 %v1737_v0 }
 0x1dd   : > { %1554 = vmatmul.mubr.msk.f32.gmra.mxu1 %vm536_vm1, %v525_v60 }
 0x1de   : > { %829 = vmatprep.mubr.f32.mxu1 %v1737_v0 }
 0x1e1   : > { %1555 = vmatmul.mubr.msk.f32.gmra.mxu1 %vm536_vm1, %v526_v61 }
 0x1e2   : > { %835 = vmatprep.mubr.f32.mxu1 %v1737_v0 }
 0x1e5   : > { %1556 = vmatmul.mubr.msk.f32.gmra.mxu1 %vm536_vm1, %v527_v62 }
 0x1e6   : > { %841 = vmatprep.mubr.f32.mxu1 %v1737_v0 }
 0x1e9   : > { %1557 = vmatmul.mubr.msk.f32.gmra.mxu1 %vm536_vm1, %v528_v63 }
 0x1ea   : > { %847 = vmatprep.mubr.f32.mxu1 %v1737_v0 }
 0x1ec   : > { %v2001_v4 = vpop.permute.xlu0 %240 }
 0x1ed   : > { %2649 = vst [vmem:[#allocation17_spill] sm:$0xff] %v2001_v4  ;;  %v404_v5 = vadd.f32 %v1873_v35, %v2001_v4  ;;  %1558 = vmatmul.mubr.msk.f32.gmra.mxu1 %vm536_vm1, %v529_v1  ;;  %v534_v35 = vpop.trf.xlu1 }
 0x1ee   : > { %853 = vmatprep.mubr.f32.mxu1 %v1737_v0 }
 0x1ef   : > { %1294 = vmatprep.mubr.f32.mxu0 %v404_v5 }
 0x1f1   : > { %1559 = vmatmul.mubr.msk.f32.gmra.mxu1 %vm536_vm1, %v530_v2  ;;  %v535_v8 = vpop.trf.xlu1 }
 0x1f2   : > { %859 = vmatprep.mubr.f32.mxu1 %v1737_v0 }
 0x1f5   : > { %1560 = vmatmul.mubr.msk.f32.gmra.mxu1 %vm536_vm1, %v531_v3 }
 0x1f6   : > { %865 = vmatprep.mubr.f32.mxu1 %v1737_v0 }
 0x1f9   : > { %1561 = vmatmul.mubr.msk.f32.gmra.mxu1 %vm536_vm1, %v532_v6 }
 0x1fa   : > { %871 = vmatprep.mubr.f32.mxu1 %v1737_v0 }
 0x1fd   : > { %1562 = vmatmul.mubr.msk.f32.gmra.mxu1 %vm536_vm1, %v533_v7 }
 0x1fe   : > { %877 = vmatprep.mubr.f32.mxu1 %v1737_v0 }
 0x201   : > { %1563 = vmatmul.mubr.msk.f32.gmra.mxu1 %vm536_vm1, %v534_v35 }
 0x202   : > { %883 = vmatprep.mubr.f32.mxu1 %v1737_v0 }
 0x205   : > { %1564 = vmatmul.mubr.msk.f32.gmra.mxu1 %vm536_vm1, %v535_v8 }
 0x249   : > { %v2018_v9 = vpop.f32.mrf.mxu1 }
 0x24b   : > { %v2020_v10 = vpop.f32.mrf.mxu1 }
 0x24d   : > { %v2022_v11 = vpop.f32.mrf.mxu1 }
 0x24f   : > { %v2024_v12 = vpop.f32.mrf.mxu1 }
 0x250   : > { %2650 = vst [vmem:[#allocation18_spill] sm:$0xff] %v2024_v12 }
 0x251   : > { %v2026_v13 = vpop.f32.mrf.mxu1 }
 0x252   : > { %v890_v49 = vmax.f32 %v2018_v9, %v2026_v13 }
 0x253   : > { %v2028_v14 = vpop.f32.mrf.mxu1 }
 0x254   : > { %2651 = vst [vmem:[#allocation19_spill] sm:$0xff] %v2028_v14 }
 0x255   : > { %v2030_v15 = vpop.f32.mrf.mxu1 }
 0x256   : > { %v891_v46 = vmax.f32 %v2022_v11, %v2030_v15 }
 0x257   : > { %v2032_v16 = vpop.f32.mrf.mxu1 }
 0x258   : > { %2652 = vst [vmem:[#allocation20_spill] sm:$0xff] %v2032_v16 }
 0x259   : > { %v2034_v0 = vpop.f32.mrf.mxu1 }
 0x25a   : > { %v892_v44 = vmax.f32 %v890_v49, %v2034_v0 }
 0x25b   : > { %v2036_v17 = vpop.f32.mrf.mxu1 }
 0x25d   : > { %v2038_v18 = vpop.f32.mrf.mxu1 }
 0x25e   : > { %v893_v45 = vmax.f32 %v891_v46, %v2038_v18 }
 0x25f   : > { %v2040_v19 = vpop.f32.mrf.mxu1 }
 0x260   : > { %2653 = vst [vmem:[#allocation21_spill] sm:$0xff] %v2040_v19 }
 0x261   : > { %v2042_v20 = vpop.f32.mrf.mxu1 }
 0x262   : > { %v894_v43 = vmax.f32 %v892_v44, %v2042_v20 }
 0x263   : > { %v2044_v21 = vpop.f32.mrf.mxu1 }
 0x265   : > { %v2046_v22 = vpop.f32.mrf.mxu1 }
 0x266   : > { %v895_v40 = vmax.f32 %v893_v45, %v2046_v22 }
 0x267   : > { %v2048_v23 = vpop.f32.mrf.mxu1 }
 0x268   : > { %2654 = vst [vmem:[#allocation22_spill] sm:$0xff] %v2048_v23 }
 0x269   : > { %v2050_v24 = vpop.f32.mrf.mxu1 }
 0x26a   : > { %2655 = vst [vmem:[#allocation23_spill] sm:$0xff] %v2050_v24  ;;  %v896_v38 = vmax.f32 %v894_v43, %v2050_v24 }
 0x26b   : > { %v2052_v25 = vpop.f32.mrf.mxu1 }
 0x26c   : > { %2656 = vst [vmem:[#allocation24_spill] sm:$0xff] %v2052_v25 }
 0x26d   : > { %v2054_v26 = vpop.f32.mrf.mxu1 }
 0x26e   : > { %v897_v39 = vmax.f32 %v895_v40, %v2054_v26 }
 0x26f   : > { %v2056_v27 = vpop.f32.mrf.mxu1 }
 0x270   : > { %2657 = vst [vmem:[#allocation25_spill] sm:$0xff] %v2056_v27 }
 0x271   : > { %v2058_v28 = vpop.f32.mrf.mxu1 }
 0x272   : > { %2658 = vst [vmem:[#allocation26_spill] sm:$0xff] %v2058_v28  ;;  %v898_v37 = vmax.f32 %v896_v38, %v2058_v28 }
 0x273   : > { %v2060_v29 = vpop.f32.mrf.mxu1 }
 0x275   : > { %v2062_v30 = vpop.f32.mrf.mxu1 }
 0x276   : > { %v899_v49 = vmax.f32 %v897_v39, %v2062_v30 }
 0x277   : > { %v2064_v31 = vpop.f32.mrf.mxu1 }
 0x279   : > { %v2066_v32 = vpop.f32.mrf.mxu1 }
 0x27a   : > { %2659 = vst [vmem:[#allocation27_spill] sm:$0xff] %v2066_v32  ;;  %v900_v46 = vmax.f32 %v898_v37, %v2066_v32 }
 0x27b   : > { %v2068_v33 = vpop.f32.mrf.mxu1 }
 0x27d   : > { %v2070_v50 = vpop.f32.mrf.mxu1 }
 0x27e   : > { %v901_v44 = vmax.f32 %v899_v49, %v2070_v50  ;;  %v928_v49 = vmax.f32 %v2024_v12, %v2032_v16 }
 0x27f   : > { %v2072_v51 = vpop.f32.mrf.mxu1 }
 0x281   : > { %v2074_v52 = vpop.f32.mrf.mxu1 }
 0x282   : > { %v902_v45 = vmax.f32 %v900_v46, %v2074_v52 }
 0x283   : > { %v2076_v53 = vpop.f32.mrf.mxu1 }
 0x285   : > { %v2078_v54 = vpop.f32.mrf.mxu1 }
 0x286   : > { %2660 = vst [vmem:[#allocation28_spill] sm:$0xff] %v2078_v54  ;;  %v903_v43 = vmax.f32 %v901_v44, %v2078_v54 }
 0x287   : > { %v2080_v55 = vpop.f32.mrf.mxu1 }
 0x289   : > { %v2082_v56 = vpop.f32.mrf.mxu1 }
 0x28a   : > { %v904_v40 = vmax.f32 %v902_v45, %v2082_v56  ;;  %v927_v45 = vmax.f32 %v2020_v10, %v2028_v14 }
 0x28b   : > { %v2084_v57 = vpop.f32.mrf.mxu1 }
 0x28d   : > { %v2086_v58 = vpop.f32.mrf.mxu1 }
 0x28e   : > { %v905_v38 = vmax.f32 %v903_v43, %v2086_v58  ;;  %v930_v43 = vmax.f32 %v928_v49, %v2040_v19 }
 0x28f   : > { %v2088_v59 = vpop.f32.mrf.mxu1 }
 0x290   : > { %v932_v16 = vmax.f32 %v930_v43, %v2048_v23 }
 0x291   : > { %v2090_v60 = vpop.f32.mrf.mxu1 }
 0x292   : > { %2661 = vst [vmem:[#allocation29_spill] sm:$0xff] %v2090_v60  ;;  %v906_v39 = vmax.f32 %v904_v40, %v2090_v60  ;;  %v929_v60 = vmax.f32 %v927_v45, %v2036_v17  ;;  %v934_v49 = vmax.f32 %v932_v16, %v2056_v27 }
 0x293   : > { %v2092_v61 = vpop.f32.mrf.mxu1 }
 0x294   : > { %v931_v14 = vmax.f32 %v929_v60, %v2044_v21  ;;  %v936_v43 = vmax.f32 %v934_v49, %v2064_v31 }
 0x295   : > { %v2094_v62 = vpop.f32.mrf.mxu1 }
 0x296   : > { %2662 = vst [vmem:[#allocation30_spill] sm:$0xff] %v2094_v62  ;;  %v907_v37 = vmax.f32 %v905_v38, %v2094_v62  ;;  %v933_v45 = vmax.f32 %v931_v14, %v2052_v25  ;;  %v938_v16 = vmax.f32 %v936_v43, %v2072_v51 }
 0x297   : > { %v2096_v63 = vpop.f32.mrf.mxu1 }
 0x298   : > { %v935_v60 = vmax.f32 %v933_v45, %v2060_v29  ;;  %v940_v14 = vmax.f32 %v938_v16, %v2080_v55 }
 0x299   : > { %v2098_v1 = vpop.f32.mrf.mxu1 }
 0x29a   : > { %v908_v46 = vmax.f32 %v906_v39, %v2098_v1  ;;  %v937_v27 = vmax.f32 %v935_v60, %v2068_v33 }
 0x29b   : > { %v2100_v2 = vpop.f32.mrf.mxu1 }
 0x29c   : > { %v939_v49 = vmax.f32 %v937_v27, %v2076_v53 }
 0x29d   : > { %v2102_v3 = vpop.f32.mrf.mxu1 }
 0x29e   : > { %v909_v44 = vmax.f32 %v907_v37, %v2102_v3 }
 0x29f   : > { %v2104_v5 = vpop.f32.mrf.mxu1 }
 0x2a1   : > { %v2106_v6 = vpop.f32.mrf.mxu1 }
 0x2a2   : > { %v910_v40 = vmax.f32 %v908_v46, %v2106_v6 }
 0x2a3   : > { %v2108_v7 = vpop.f32.mrf.mxu1 }
 0x2a5   : > { %v2110_v35 = vpop.f32.mrf.mxu1 }
 0x2a6   : > { %v911_v38 = vmax.f32 %v909_v44, %v2110_v35 }
 0x2a7   : > { %v2112_v8 = vpop.f32.mrf.mxu1 }
 0x2a9   : > { %v2114_v48 = vpop.f32.mrf.mxu1 }
 0x2aa   : > { %v912_v39 = vmax.f32 %v910_v40, %v2114_v48 }
 0x2ab   : > { %v2120_v47 = vpop.f32.mrf.mxu1 }
 0x2ad   : > { %v2124_v42 = vpop.f32.mrf.mxu1 }
 0x2ae   : > { %v913_v37 = vmax.f32 %v911_v38, %v2124_v42 }
 0x2af   : > { %v2128_v41 = vpop.f32.mrf.mxu1 }
 0x2b1   : > { %v2132_v36 = vpop.f32.mrf.mxu1 }
 0x2b2   : > { %v914_v46 = vmax.f32 %v912_v39, %v2132_v36 }
 0x2b3   : > { %v2136_v34 = vpop.f32.mrf.mxu1 }
 0x2b5   : > { %v2140_v4 = vpop.f32.mrf.mxu1 }
 0x2b6   : > { %v915_v44 = vmax.f32 %v913_v37, %v2140_v4 }
 0x2b7   : > { %v2144_v24 = vpop.f32.mrf.mxu1 }
 0x2b9   : > { %v2148_v28 = vpop.f32.mrf.mxu1 }
 0x2ba   : > { %2663 = vst [vmem:[#allocation31_spill] sm:$0xff] %v2148_v28  ;;  %v916_v40 = vmax.f32 %v914_v46, %v2148_v28  ;;  %v942_v46 = vmax.f32 %v940_v14, %v2088_v59 }
 0x2bb   : > { %v2152_v32 = vpop.f32.mrf.mxu1 }
 0x2bc   : > { %v944_v45 = vmax.f32 %v942_v46, %v2096_v63 }
 0x2bd   : > { %v2158_v54 = vpop.f32.mrf.mxu1 }
 0x2be   : > { %2664 = vst [vmem:[#allocation32_spill] sm:$0xff] %v2158_v54  ;;  %v917_v38 = vmax.f32 %v915_v44, %v2158_v54  ;;  %v941_v54 = vmax.f32 %v939_v49, %v2084_v57 }
 0x2bf   : > { %v2165_v62 = vpop.f32.mrf.mxu1 }
 0x2c0   : > { %v943_v43 = vmax.f32 %v941_v54, %v2092_v61 }
 0x2c1   : > { %v2171_v12 = vpop.f32.mrf.mxu1 }
 0x2c2   : > { %v918_v39 = vmax.f32 %v916_v40, %v2171_v12  ;;  %v946_v40 = vmax.f32 %v944_v45, %v2104_v5  ;;  %v945_v60 = vmax.f32 %v943_v43, %v2100_v2 }
 0x2c3   : > { %v2177_v19 = vpop.f32.mrf.mxu1 }
 0x2c4   : > { %v948_v16 = vmax.f32 %v946_v40, %v2112_v8  ;;  %v947_v27 = vmax.f32 %v945_v60, %v2108_v7 }
 0x2c5   : > { %v2183_v23 = vpop.f32.mrf.mxu1 }
 0x2c6   : > { %v919_v37 = vmax.f32 %v917_v38, %v2183_v23  ;;  %v949_v49 = vmax.f32 %v947_v27, %v2120_v47 }
 0x2c8   : > { %v920_v25 = vmax.f32 %v918_v39, %v919_v37  ;;  %v950_v37 = vmax.f32 %v948_v16, %v2128_v41  ;;  %v951_v54 = vmax.f32 %v949_v49, %v2136_v34 }
 0x2ca   : > { %v921_v44 = vrot.slane %v920_v25, 4  ;;  %v952_v46 = vmax.f32 %v950_v37, %v2144_v24  ;;  %v953_v43 = vmax.f32 %v951_v54, %v2152_v32 }
 0x2cc   : > { %v922_v28 = vmax.f32 %v920_v25, %v921_v44  ;;  %v2203_v25 = vpop.f32.mrf.mxu1  ;;  %v954_v44 = vmax.f32 %v952_v46, %v2165_v62  ;;  %v955_v40 = vmax.f32 %v953_v43, %v2177_v19 }
 0x2ce   : > { %v923_v38 = vrot.slane %v922_v28, 2 }
 0x2d0   : > { %v924_v39 = vmax.f32 %v922_v28, %v923_v38  ;;  %v956_v28 = vmax.f32 %v954_v44, %v2203_v25 }
 0x2d2   : > { %v925_v14 = vrot.slane %v924_v39, 1  ;;  %v957_v27 = vmax.f32 %v955_v40, %v956_v28 }
 0x2d4   : > { %v2207_v45 = vmax.f32 %v924_v39, %v925_v14  ;;  %v958_v54 = vrot.slane %v957_v27, 4 }
 0x2d6   : > { %v964_v38 = vsub.f32 %v2018_v9, %v2207_v45  ;;  %v966_v60 = vsub.f32 %v2022_v11, %v2207_v45  ;;  %v968_v16 = vsub.f32 %v2026_v13, %v2207_v45  ;;  %v970_v39 = vsub.f32 %v2030_v15, %v2207_v45 }
 0x2d7   : > { %v972_v49 = vsub.f32 %v2034_v0, %v2207_v45  ;;  %v974_v9 = vsub.f32 %v2038_v18, %v2207_v45  ;;  %v976_v13 = vsub.f32 %v2042_v20, %v2207_v45  ;;  %v959_v43 = vmax.f32 %v957_v27, %v958_v54  ;;  %v2665_v0 = vld [vmem:[#allocation23_spill] sm:$0xff]  ;;  %v2666_v20 = vld [vmem:[#allocation26_spill] sm:$0xff] }
 0x2d8   : > { %v1028_v37 = vmul.f32 1.442695, %v964_v38  ;;  %v1032_v14 = vmul.f32 1.442695, %v966_v60  ;;  %v1036_v46 = vmul.f32 1.442695, %v968_v16  ;;  %v978_v15 = vsub.f32 %v2046_v22, %v2207_v45 }
 0x2d9   : > { %v1040_v11 = vmul.f32 1.442695, %v970_v39  ;;  %v1044_v44 = vmul.f32 1.442695, %v972_v49  ;;  %v1048_v28 = vmul.f32 1.442695, %v974_v9  ;;  %v980_v40 = vsub.f32 %v2665_v0, %v2207_v45 }
 0x2da   : > { %1581 = vpow2.f32 %v1028_v37  ;;  %v1052_v38 = vmul.f32 1.442695, %v976_v13  ;;  %v960_v60 = vrot.slane %v959_v43, 2  ;;  %v982_v18 = vsub.f32 %v2054_v26, %v2207_v45  ;;  %v2667_v54 = vld [vmem:[#allocation27_spill] sm:$0xff] }
 0x2db   : > { %1583 = vpow2.f32 %v1032_v14  ;;  %v1056_v16 = vmul.f32 1.442695, %v978_v15  ;;  %v984_v39 = vsub.f32 %v2666_v20, %v2207_v45  ;;  %v1060_v27 = vmul.f32 1.442695, %v980_v40  ;;  %v2668_v15 = vld [vmem:[#allocation28_spill] sm:$0xff] }
 0x2dc   : > { %1585 = vpow2.f32 %v1036_v46  ;;  %v961_v37 = vmax.f32 %v959_v43, %v960_v60  ;;  %v986_v14 = vsub.f32 %v2062_v30, %v2207_v45  ;;  %v1064_v49 = vmul.f32 1.442695, %v982_v18 }
 0x2dd   : > { %1587 = vpow2.f32 %v1040_v11  ;;  %v988_v26 = vsub.f32 %v2667_v54, %v2207_v45  ;;  %v990_v9 = vsub.f32 %v2070_v50, %v2207_v45  ;;  %v1068_v11 = vmul.f32 1.442695, %v984_v39  ;;  %v2669_v39 = vld [vmem:[#allocation29_spill] sm:$0xff]  ;;  %v2670_v54 = vld [vmem:[#allocation30_spill] sm:$0xff] }
 0x2de   : > { %1589 = vpow2.f32 %v1044_v44  ;;  %v992_v30 = vsub.f32 %v2074_v52, %v2207_v45  ;;  %v962_v43 = vrot.slane %v961_v37, 1  ;;  %v1072_v0 = vmul.f32 1.442695, %v986_v14 }
 0x2df   : > { %1591 = vpow2.f32 %v1048_v28  ;;  %v994_v28 = vsub.f32 %v2668_v15, %v2207_v45  ;;  %v996_v50 = vsub.f32 %v2082_v56, %v2207_v45  ;;  %v1076_v60 = vmul.f32 1.442695, %v988_v26 }
 0x2e0   : > { %1593 = vpow2.f32 %v1052_v38  ;;  %v998_v18 = vsub.f32 %v2086_v58, %v2207_v45  ;;  %v1084_v14 = vmul.f32 1.442695, %v992_v30  ;;  %v1006_v15 = vsub.f32 %v2102_v3, %v2207_v45 }
 0x2e1   : > { %1595 = vpow2.f32 %v1056_v16  ;;  %v1080_v16 = vmul.f32 1.442695, %v990_v9  ;;  %v1088_v56 = vmul.f32 1.442695, %v994_v28  ;;  %v1004_v9 = vsub.f32 %v2098_v1, %v2207_v45 }
 0x2e2   : > { %1597 = vpow2.f32 %v1060_v27  ;;  %v1000_v27 = vsub.f32 %v2669_v39, %v2207_v45  ;;  %v1008_v3 = vsub.f32 %v2106_v6, %v2207_v45  ;;  %v2673_v6 = vld [vmem:[#allocation20_spill] sm:$0xff] }
 0x2e3   : > { %1599 = vpow2.f32 %v1064_v49  ;;  %v2264_v49 = vmax.f32 %v961_v37, %v962_v43  ;;  %v1096_v37 = vmul.f32 1.442695, %v998_v18  ;;  %v1108_v18 = vmul.f32 1.442695, %v1004_v9 }
 0x2e4   : > { %1601 = vpow2.f32 %v1068_v11  ;;  %v1092_v11 = vmul.f32 1.442695, %v996_v50  ;;  %v1100_v28 = vmul.f32 1.442695, %v1000_v27  ;;  %v2671_v50 = vld [vmem:[#allocation18_spill] sm:$0xff] }
 0x2e5   : > { %1603 = vpow2.f32 %v1072_v0  ;;  %v965_v0 = vsub.f32 %v2020_v10, %v2264_v49  ;;  %v2672_v10 = vld [vmem:[#allocation19_spill] sm:$0xff] }
 0x2e6   : > { %1605 = vpow2.f32 %v1076_v60  ;;  %v967_v60 = vsub.f32 %v2671_v50, %v2264_v49  ;;  %v969_v27 = vsub.f32 %v2672_v10, %v2264_v49  ;;  %v977_v10 = vsub.f32 %v2044_v21, %v2264_v49 }
 0x2e7   : > { %v2234_v22 = vpop.eup %1581  ;;  %1607 = vpow2.f32 %v1080_v16  ;;  %v1112_v16 = vmul.f32 1.442695, %v1006_v15  ;;  %v1012_v15 = vsub.f32 %v2114_v48, %v2207_v45  ;;  %v2674_v48 = vld [vmem:[#allocation21_spill] sm:$0xff] }
 0x2e8   : > { %v2238_v46 = vpop.eup %1583  ;;  %1609 = vpow2.f32 %v1084_v14  ;;  %v1034_v9 = vmul.f32 1.442695, %v967_v60  ;;  %v975_v60 = vsub.f32 %v2674_v48, %v2264_v49 }
 0x2e9   : > { %v1156_v13 = vadd.f32 %v2238_v46, %v2234_v22  ;;  %v2246_v44 = vpop.eup %1585  ;;  %1611 = vpow2.f32 %v1088_v56 }
 0x2ea   : > { %v2253_v38 = vpop.eup %1587  ;;  %1613 = vpow2.f32 %v1092_v11 }
 0x2eb   : > { %v1157_v40 = vadd.f32 %v2246_v44, %v1156_v13  ;;  %v2260_v20 = vpop.eup %1589  ;;  %v1002_v13 = vsub.f32 %v2670_v54, %v2207_v45  ;;  %1615 = vpow2.f32 %v1096_v37  ;;  %v1010_v54 = vsub.f32 %v2110_v35, %v2207_v45 }
 0x2ec   : > { %v2269_v58 = vpop.eup %1591  ;;  %1617 = vpow2.f32 %v1100_v28  ;;  %v1116_v37 = vmul.f32 1.442695, %v1008_v3  ;;  %v973_v35 = vsub.f32 %v2036_v17, %v2264_v49  ;;  %v1038_v28 = vmul.f32 1.442695, %v969_v27 }
 0x2ed   : > { %v1158_v52 = vadd.f32 %v2253_v38, %v1157_v40  ;;  %v2276_v43 = vpop.eup %1593  ;;  %v1104_v40 = vmul.f32 1.442695, %v1002_v13  ;;  %v1030_v13 = vmul.f32 1.442695, %v965_v0  ;;  %v1016_v17 = vsub.f32 %v2132_v36, %v2207_v45 }
 0x2ee   : > { %v1046_v27 = vmul.f32 1.442695, %v973_v35 }
 0x2ef   : > { %v1159_v26 = vadd.f32 %v2260_v20, %v1158_v52  ;;  %v2283_v52 = vpop.eup %1595  ;;  %1619 = vpow2.f32 %v1104_v40  ;;  %v1014_v40 = vsub.f32 %v2124_v42, %v2207_v45  ;;  %v1132_v21 = vmul.f32 1.442695, %v1016_v17 }
 0x2f0   : > { %v2290_v14 = vpop.eup %1597  ;;  %1621 = vpow2.f32 %v1108_v18 }
 0x2f1   : > { %v1160_v30 = vadd.f32 %v2269_v58, %v1159_v26  ;;  %v971_v26 = vsub.f32 %v2673_v6, %v2264_v49  ;;  %v2297_v11 = vpop.eup %1599  ;;  %1623 = vpow2.f32 %v1112_v16  ;;  %v1124_v16 = vmul.f32 1.442695, %v1012_v15 }
 0x2f2   : > { %v2304_v0 = vpop.eup %1601  ;;  %1625 = vpow2.f32 %v1030_v13  ;;  %v1018_v13 = vsub.f32 %v2140_v4, %v2207_v45  ;;  %v1050_v15 = vmul.f32 1.442695, %v975_v60  ;;  %v2679_v60 = vld [vmem:[#allocation25_spill] sm:$0xff] }
 0x2f3   : > { %v1161_v1 = vadd.f32 %v2276_v43, %v1160_v30  ;;  %1627 = vpow2.f32 %v1034_v9  ;;  %v1042_v3 = vmul.f32 1.442695, %v971_v26  ;;  %v2311_v18 = vpop.eup %1603  ;;  %v2675_v26 = vld [vmem:[#allocation22_spill] sm:$0xff] }
 0x2f4   : > { %1629 = vpow2.f32 %v1116_v37  ;;  %v979_v9 = vsub.f32 %v2675_v26, %v2264_v49  ;;  %v1136_v48 = vmul.f32 1.442695, %v1018_v13 }
 0x2f5   : > { %v1162_v39 = vadd.f32 %v2283_v52, %v1161_v1  ;;  %v1120_v1 = vmul.f32 1.442695, %v1010_v54  ;;  %1631 = vpow2.f32 %v1038_v28 }
 0x2f7   : > { %v1163_v56 = vadd.f32 %v2290_v14, %v1162_v39  ;;  %v2315_v39 = vpop.eup %1605  ;;  %1633 = vpow2.f32 %v1120_v1  ;;  %v1054_v1 = vmul.f32 1.442695, %v977_v10 }
 0x2f8   : > { %v2320_v54 = vpop.eup %1607  ;;  %1635 = vpow2.f32 %v1042_v3  ;;  %v983_v3 = vsub.f32 %v2679_v60, %v2264_v49 }
 0x2f9   : > { %v1164_v30 = vadd.f32 %v2297_v11, %v1163_v56  ;;  %v1128_v56 = vmul.f32 1.442695, %v1014_v40  ;;  %v2324_v6 = vpop.eup %1609  ;;  %1637 = vpow2.f32 %v1124_v16  ;;  %v995_v40 = vsub.f32 %v2080_v55, %v2264_v49 }
 0x2fa   : > { %v2329_v37 = vpop.eup %1611  ;;  %1639 = vpow2.f32 %v1046_v27  ;;  %v985_v55 = vsub.f32 %v2060_v29, %v2264_v49 }
 0x2fb   : > { %v1165_v50 = vadd.f32 %v2304_v0, %v1164_v30  ;;  %v2676_v30 = vld [vmem:[#allocation24_spill] sm:$0xff]  ;;  %v2333_v28 = vpop.eup %1613  ;;  %1641 = vpow2.f32 %v1128_v56  ;;  %v991_v56 = vsub.f32 %v2072_v51, %v2264_v49  ;;  %v2683_v51 = vld [vmem:[#allocation31_spill] sm:$0xff] }
 0x2fc   : > { %v981_v35 = vsub.f32 %v2676_v30, %v2264_v49  ;;  %2677 = vst [vmem:[#allocation23_spill] sm:$0xff] %v2333_v28  ;;  %1643 = vpow2.f32 %v1050_v15  ;;  %v1090_v30 = vmul.f32 1.442695, %v995_v40  ;;  %v1020_v40 = vsub.f32 %v2683_v51, %v2207_v45 }
 0x2fd   : > { %v1166_v42 = vadd.f32 %v2311_v18, %v1165_v50  ;;  %v2338_v50 = vpop.eup %1615  ;;  %1645 = vpow2.f32 %v1132_v21  ;;  %v989_v21 = vsub.f32 %v2068_v33, %v2264_v49  ;;  %v2684_v33 = vld [vmem:[#allocation32_spill] sm:$0xff] }
 0x2fe   : > { %2678 = vst [vmem:[#allocation26_spill] sm:$0xff] %v2338_v50  ;;  %v2342_v17 = vpop.eup %1617  ;;  %v1062_v10 = vmul.f32 1.442695, %v981_v35  ;;  %1647 = vpow2.f32 %v1054_v1  ;;  %v1070_v1 = vmul.f32 1.442695, %v985_v55 }
 0x2ff   : > { %v1167_v36 = vadd.f32 %v2315_v39, %v1166_v42  ;;  %2680 = vst [vmem:[#allocation27_spill] sm:$0xff] %v2342_v17  ;;  %v993_v42 = vsub.f32 %v2076_v53, %v2264_v49  ;;  %v2347_v26 = vpop.eup %1619  ;;  %1649 = vpow2.f32 %v1136_v48  ;;  %v987_v53 = vsub.f32 %v2064_v31, %v2264_v49 }
 0x300   : > { %2681 = vst [vmem:[#allocation28_spill] sm:$0xff] %v2347_v26  ;;  %v2351_v27 = vpop.eup %1621 }
 0x301   : > { %v1168_v4 = vadd.f32 %v2320_v54, %v1167_v36  ;;  %v1058_v36 = vmul.f32 1.442695, %v979_v9  ;;  %2682 = vst [vmem:[#allocation29_spill] sm:$0xff] %v2351_v27  ;;  %v1066_v9 = vmul.f32 1.442695, %v983_v3 }
 0x302   : > { %v1086_v35 = vmul.f32 1.442695, %v993_v42  ;;  %v1082_v3 = vmul.f32 1.442695, %v991_v56  ;;  %v1022_v42 = vsub.f32 %v2684_v33, %v2207_v45 }
 0x303   : > { %v1169_v16 = vadd.f32 %v2324_v6, %v1168_v4  ;;  %v2356_v4 = vpop.eup %1623  ;;  %1651 = vpow2.f32 %v1058_v36  ;;  %v1074_v36 = vmul.f32 1.442695, %v987_v53 }
 0x304   : > { %v2360_v15 = vpop.eup %1625  ;;  %1653 = vpow2.f32 %v1062_v10  ;;  %v1078_v10 = vmul.f32 1.442695, %v989_v21  ;;  %v1026_v21 = vsub.f32 %v2183_v23, %v2207_v45  ;;  %v997_v23 = vsub.f32 %v2084_v57, %v2264_v49 }
 0x305   : > { %v1170_v13 = vadd.f32 %v2329_v37, %v1169_v16  ;;  %v2365_v60 = vpop.eup %1627  ;;  %1655 = vpow2.f32 %v1090_v30  ;;  %v1024_v30 = vsub.f32 %v2171_v12, %v2207_v45  ;;  %v1001_v57 = vsub.f32 %v2092_v61, %v2264_v49 }
 0x306   : > { %v2369_v48 = vpop.eup %1629  ;;  %v1193_v16 = vadd.f32 %v2365_v60, %v2360_v15  ;;  %1657 = vpow2.f32 %v1066_v9 }
 0x307   : > { %v1171_v29 = vadd.f32 %v2333_v28, %v1170_v13  ;;  %v2374_v13 = vpop.eup %1631  ;;  %1659 = vpow2.f32 %v1086_v35 }
 0x308   : > { %v2378_v28 = vpop.eup %1633  ;;  %1661 = vpow2.f32 %v1070_v1 }
 0x309   : > { %v1172_v31 = vadd.f32 %v2338_v50, %v1171_v29  ;;  %v1194_v29 = vadd.f32 %v2374_v13, %v1193_v16  ;;  %v2382_v56 = vpop.eup %1635  ;;  %v1140_v50 = vmul.f32 1.442695, %v1020_v40  ;;  %1663 = vpow2.f32 %v1082_v3 }
 0x30a   : > { %v2386_v51 = vpop.eup %1637  ;;  %1665 = vpow2.f32 %v1074_v36  ;;  %v1148_v16 = vmul.f32 1.442695, %v1024_v30  ;;  %v999_v30 = vsub.f32 %v2088_v59, %v2264_v49  ;;  %v1003_v59 = vsub.f32 %v2096_v63, %v2264_v49 }
 0x30b   : > { %v1173_v55 = vadd.f32 %v2342_v17, %v1172_v31  ;;  %v1195_v53 = vadd.f32 %v2382_v56, %v1194_v29  ;;  %v2390_v33 = vpop.eup %1639  ;;  %v1144_v31 = vmul.f32 1.442695, %v1022_v42  ;;  %1667 = vpow2.f32 %v1078_v10 }
 0x30c   : > { %v2394_v35 = vpop.eup %1641  ;;  %1669 = vpow2.f32 %v1140_v50  ;;  %v1152_v42 = vmul.f32 1.442695, %v1026_v21  ;;  %v1098_v17 = vmul.f32 1.442695, %v999_v30  ;;  %v1102_v63 = vmul.f32 1.442695, %v1001_v57 }
 0x30d   : > { %v1174_v9 = vadd.f32 %v2347_v26, %v1173_v55  ;;  %v1196_v1 = vadd.f32 %v2390_v33, %v1195_v53  ;;  %v2398_v40 = vpop.eup %1643  ;;  %1671 = vpow2.f32 %v1144_v31  ;;  %v1007_v30 = vsub.f32 %v2104_v5, %v2264_v49 }
 0x30e   : > { %v2400_v3 = vpop.eup %1645  ;;  %1673 = vpow2.f32 %v1148_v16 }
 0x30f   : > { %v1175_v12 = vadd.f32 %v2351_v27, %v1174_v9  ;;  %v1197_v45 = vadd.f32 %v2398_v40, %v1196_v1  ;;  %v2406_v36 = vpop.eup %1647  ;;  %1675 = vpow2.f32 %v1152_v42 }
 0x310   : > { %v2408_v29 = vpop.eup %1649 }
 0x311   : > { %v1176_v55 = vadd.f32 %v2356_v4, %v1175_v12  ;;  %v1198_v50 = vadd.f32 %v2406_v36, %v1197_v45  ;;  %v2414_v9 = vpop.eup %1651  ;;  %v1094_v12 = vmul.f32 1.442695, %v997_v23  ;;  %v1005_v23 = vsub.f32 %v2100_v2, %v2264_v49 }
 0x312   : > { %v2418_v53 = vpop.eup %1653  ;;  %v1106_v2 = vmul.f32 1.442695, %v1003_v59  ;;  %v1114_v59 = vmul.f32 1.442695, %v1007_v30  ;;  %v1025_v30 = vsub.f32 %v2177_v19, %v2264_v49 }
 0x313   : > { %v1177_v10 = vadd.f32 %v2369_v48, %v1176_v55  ;;  %v1199_v31 = vadd.f32 %v2414_v9, %v1198_v50  ;;  %v2422_v1 = vpop.eup %1655  ;;  %1677 = vpow2.f32 %v1094_v12  ;;  %v1009_v12 = vsub.f32 %v2108_v7, %v2264_v49 }
 0x314   : > { %v1658_v55 = vpop.eup %1657  ;;  %1230 = vmatprep.subr.mxu0 %v2422_v1  ;;  %1679 = vpow2.f32 %v1098_v17  ;;  %v1011_v17 = vsub.f32 %v2112_v8, %v2264_v49 }
 0x315   : > { %v1178_v21 = vadd.f32 %v2378_v28, %v1177_v10  ;;  %v1200_v61 = vadd.f32 %v2418_v53, %v1199_v31  ;;  %v1660_v16 = vpop.eup %1659  ;;  %1231 = vmatpush1.msra.mxu0 %v2329_v37  ;;  %1681 = vpow2.f32 %v1102_v63  ;;  %v1015_v63 = vsub.f32 %v2128_v41, %v2264_v49 }
 0x316   : > { %v1662_v10 = vpop.eup %1661  ;;  %1232 = vmatprep.subr.mxu0 %v1660_v16  ;;  %1683 = vpow2.f32 %v1106_v2 }
 0x317   : > { %v1179_v45 = vadd.f32 %v2386_v51, %v1178_v21  ;;  %v1201_v26 = vadd.f32 %v1658_v55, %v1200_v61  ;;  %v1664_v42 = vpop.eup %1663  ;;  %1233 = vmatpush1.msra.mxu0 %v2324_v6  ;;  %v1013_v61 = vsub.f32 %v2120_v47, %v2264_v49 }
 0x318   : > { %v1666_v21 = vpop.eup %1665  ;;  %1234 = vmatprep.subr.mxu0 %v1664_v42 }
 0x319   : > { %v1180_v50 = vadd.f32 %v2394_v35, %v1179_v45  ;;  %v1202_v27 = vadd.f32 %v1662_v10, %v1201_v26  ;;  %v1668_v37 = vpop.eup %1667  ;;  %1235 = vmatpush1.msra.mxu0 %v2320_v54  ;;  %v1110_v45 = vmul.f32 1.442695, %v1005_v23  ;;  %v1126_v41 = vmul.f32 1.442695, %v1013_v61 }
 0x31a   : > { %1236 = vmatprep.subr.mxu0 %v1668_v37  ;;  %v2441_v6 = vpop.eup %1669 }
 0x31b   : > { %v1181_v31 = vadd.f32 %v2400_v3, %v1180_v50  ;;  %v1203_v5 = vadd.f32 %v1666_v21, %v1202_v27  ;;  %1237 = vmatpush1.msra.mxu0 %v2315_v39  ;;  %v2447_v54 = vpop.eup %1671  ;;  %v1027_v27 = vsub.f32 %v2203_v25, %v2264_v49  ;;  %1685 = vpow2.f32 %v1110_v45 }
 0x31c   : > { %1238 = vmatprep.subr.mxu0 %v1666_v21  ;;  %v1118_v39 = vmul.f32 1.442695, %v1009_v12  ;;  %v2455_v50 = vpop.eup %1673  ;;  %1687 = vpow2.f32 %v1114_v59  ;;  %v1122_v25 = vmul.f32 1.442695, %v1011_v17 }
 0x31d   : > { %v1182_v57 = vadd.f32 %v2408_v29, %v1181_v31  ;;  %v1204_v7 = vadd.f32 %v1668_v37, %v1203_v5  ;;  %1239 = vmatpush1.msra.mxu0 %v2311_v18  ;;  %v2463_v21 = vpop.eup %1675 }
 0x31e   : > { %1240 = vmatprep.subr.mxu0 %v1662_v10  ;;  %v1017_v10 = vsub.f32 %v2136_v34, %v2264_v49  ;;  %1689 = vpow2.f32 %v1118_v39  ;;  %v1019_v34 = vsub.f32 %v2144_v24, %v2264_v49 }
 0x31f   : > { %v1183_v26 = vadd.f32 %v2441_v6, %v1182_v57  ;;  %v1205_v23 = vadd.f32 %v1664_v42, %v1204_v7  ;;  %1241 = vmatpush1.msra.mxu0 %v2304_v0  ;;  %v1023_v42 = vsub.f32 %v2165_v62, %v2264_v49  ;;  %v1154_v0 = vmul.f32 1.442695, %v1027_v27 }
 0x320   : > { %1242 = vmatprep.subr.mxu0 %v1658_v55  ;;  %v2475_v55 = vpop.eup %1677  ;;  %v1021_v62 = vsub.f32 %v2152_v32, %v2264_v49  ;;  %1691 = vpow2.f32 %v1122_v25  ;;  %v1138_v32 = vmul.f32 1.442695, %v1019_v34  ;;  %v2698_v34 = vld [vmem:[#allocation10_spill] sm:$0xff] }
 0x321   : > { %v1184_v8 = vadd.f32 %v2447_v54, %v1183_v26  ;;  %v1206_v18 = vadd.f32 %v1660_v16, %v1205_v23  ;;  %1243 = vmatpush1.msra.mxu0 %v2297_v11  ;;  %v1130_v16 = vmul.f32 1.442695, %v1015_v63  ;;  %v1150_v11 = vmul.f32 1.442695, %v1025_v30  ;;  %v2692_v23 = vld [vmem:[#allocation23_spill] sm:$0xff] }
 0x322   : > { %1244 = vmatprep.subr.mxu0 %v2418_v53  ;;  %1693 = vpow2.f32 %v1126_v41  ;;  %v1134_v53 = vmul.f32 1.442695, %v1017_v10  ;;  %v1146_v37 = vmul.f32 1.442695, %v1023_v42  ;;  %v1142_v49 = vmul.f32 1.442695, %v1021_v62 }
 0x323   : > { %v1185_v47 = vadd.f32 %v2455_v50, %v1184_v8  ;;  %v1207_v31 = vadd.f32 %v2422_v1, %v1206_v18  ;;  %1245 = vmatpush1.msra.mxu0 %v2290_v14  ;;  %v2484_v1 = vpop.eup %1679  ;;  %1695 = vpow2.f32 %v1154_v0  ;;  %v2693_v63 = vld [vmem:[#allocation3_spill] sm:$0xff]  ;;  %v2696_v42 = vld [vmem:[#allocation8_spill] sm:$0xff] }
 0x324   : > { %1246 = vmatprep.subr.mxu0 %v2414_v9  ;;  %v2489_v14 = vpop.eup %1681  ;;  %1697 = vpow2.f32 %v1130_v16 }
 0x325   : > { %v2471_v19 = vadd.f32 %v2463_v21, %v1185_v47  ;;  %v1208_v2 = vadd.f32 %v2475_v55, %v1207_v31  ;;  %1247 = vmatpush1.msra.mxu0 %v2283_v52  ;;  %1699 = vpow2.f32 %v1150_v11  ;;  %v2494_v12 = vpop.eup %1683  ;;  %v2694_v47 = vld [vmem:[#allocation6_spill] sm:$0xff]  ;;  %v2697_v31 = vld [vmem:[#allocation7_spill] sm:$0xff]  ;;  %v2699_v11 = vld [vmem:[#allocation9_spill] sm:$0xff] }
 0x326   : > { %1248 = vmatprep.subr.mxu0 %v2406_v36  ;;  %1701 = vpow2.f32 %v1134_v53 }
 0x327   : > { %v1209_v24 = vadd.f32 %v2484_v1, %v1208_v2  ;;  %1249 = vmatpush1.msra.mxu0 %v2276_v43  ;;  %1703 = vpow2.f32 %v1146_v37 }
 0x328   : > { %1250 = vmatprep.subr.mxu0 %v2398_v40  ;;  %v1686_v36 = vpop.eup %1685  ;;  %1705 = vpow2.f32 %v1138_v32  ;;  %v2702_v32 = vld [vmem:[#allocation14_spill] sm:$0xff] }
 0x329   : > { %v1210_v9 = vadd.f32 %v2489_v14, %v1209_v24  ;;  %1251 = vmatpush1.msra.mxu0 %v2269_v58  ;;  %1707 = vpow2.f32 %v1142_v49  ;;  %v1688_v57 = vpop.eup %1687  ;;  %v2701_v24 = vld [vmem:[#allocation11_spill] sm:$0xff] }
 0x32a   : > { %1252 = vmatprep.subr.mxu0 %v2390_v33 }
 0x32b   : > { %v1211_v52 = vadd.f32 %v2494_v12, %v1210_v9  ;;  %1253 = vmatpush1.msra.mxu0 %v2260_v20  ;;  %v1690_v58 = vpop.eup %1689 }
 0x32c   : > { %1254 = vmatprep.subr.mxu0 %v2382_v56 }
 0x32d   : > { %v1212_v43 = vadd.f32 %v1686_v36, %v1211_v52  ;;  %1255 = vmatpush1.msra.mxu0 %v2253_v38  ;;  %v1692_v33 = vpop.eup %1691 }
 0x32e   : > { %1256 = vmatprep.subr.mxu0 %v2374_v13 }
 0x32f   : > { %v1213_v40 = vadd.f32 %v1688_v57, %v1212_v43  ;;  %1257 = vmatpush1.msra.mxu0 %v2246_v44  ;;  %v1694_v20 = vpop.eup %1693 }
 0x330   : > { %1258 = vmatprep.subr.mxu0 %v2365_v60  ;;  %v1696_v56 = vpop.eup %1695 }
 0x331   : > { %v1214_v45 = vadd.f32 %v1690_v58, %v1213_v40  ;;  %1259 = vmatpush1.msra.mxu0 %v2238_v46  ;;  %v1698_v38 = vpop.eup %1697 }
 0x332   : > { %1260 = vmatprep.subr.mxu0 %v2360_v15  ;;  %v1700_v13 = vpop.eup %1699 }
 0x333   : > { %v1215_v5 = vadd.f32 %v1692_v33, %v1214_v45  ;;  %1261 = vmatpush1.msra.mxu0 %v2234_v22  ;;  %v1702_v44 = vpop.eup %1701 }
 0x334   : > { %1262 = vmatprep.subr.mxu0 %v1696_v56  ;;  %v1704_v60 = vpop.eup %1703 }
 0x335   : > { %v1216_v17 = vadd.f32 %v1694_v20, %v1215_v5  ;;  %1263 = vmatpush2.msra.mxu0 %v2463_v21  ;;  %v1706_v46 = vpop.eup %1705  ;;  %v2695_v21 = vld [vmem:[#allocation5_spill] sm:$0xff] }
 0x336   : > { %1264 = vmatprep.subr.mxu0 %v1700_v13  ;;  %v1708_v7 = vpop.eup %1707 }
 0x337   : > { %v1217_v26 = vadd.f32 %v1698_v38, %v1216_v17  ;;  %1265 = vmatpush2.msra.mxu0 %v2455_v50  ;;  %v251_v50 = vpop.permute.xlu0 %250 }
 0x338   : > { %1266 = vmatprep.subr.mxu0 %v1704_v60  ;;  %v416_v25 = vadd.f32 %v2694_v47, %v251_v50  ;;  %v414_v10 = vadd.f32 %v2695_v21, %v251_v50  ;;  %v1715_v50 = vld [vmem:[%s1788_s24 + $0x10] sm:$0xff]  ;;  %v1716_v21 = vld [vmem:[%s1788_s24 + $0x18] sm:$0xff] }
 0x339   : > { %v1218_v59 = vadd.f32 %v1702_v44, %v1217_v26  ;;  %1267 = vmatpush2.msra.mxu0 %v2447_v54 }
 0x33a   : > { %1268 = vmatprep.subr.mxu0 %v1708_v7 }
 0x33b   : > { %v1219_v15 = vadd.f32 %v1706_v46, %v1218_v59  ;;  %1269 = vmatpush2.msra.mxu0 %v2441_v6  ;;  %v2690_v6 = vld [vmem:[#allocation2_spill] sm:$0xff]  ;;  %v261_v0 = vpop.permute.xlu0 %260 }
 0x33c   : > { %1270 = vmatprep.subr.mxu0 %v1706_v46  ;;  %v428_v16 = vadd.f32 %v2698_v34, %v261_v0  ;;  %v426_v2 = vadd.f32 %v2699_v11, %v261_v0 }
 0x33d   : > { %v1220_v22 = vadd.f32 %v1708_v7, %v1219_v15  ;;  %1271 = vmatpush2.msra.mxu0 %v2408_v29  ;;  %v2685_v29 = vld [vmem:[#allocation29_spill] sm:$0xff] }
 0x33e   : > { %1272 = vmatprep.subr.mxu0 %v1702_v44 }
 0x33f   : > { %v1221_v61 = vadd.f32 %v1704_v60, %v1220_v22  ;;  %1273 = vmatpush2.msra.mxu0 %v2400_v3  ;;  %v2686_v3 = vld [vmem:[#allocation28_spill] sm:$0xff]  ;;  %v271_v37 = vpop.permute.xlu0 %270 }
 0x340   : > { %1274 = vmatprep.subr.mxu0 %v1698_v38  ;;  %v440_v49 = vadd.f32 %v2702_v32, %v271_v37 }
 0x341   : > { %v1222_v27 = vadd.f32 %v1700_v13, %v1221_v61  ;;  %1275 = vmatpush2.msra.mxu0 %v2394_v35  ;;  %v2687_v35 = vld [vmem:[#allocation27_spill] sm:$0xff] }
 0x342   : > { %1276 = vmatprep.subr.mxu0 %v1694_v20 }
 0x343   : > { %v1223_v8 = vadd.f32 %v1696_v56, %v1222_v27  ;;  %1277 = vmatpush2.msra.mxu0 %v2386_v51  ;;  %v246_v51 = vpop.permute.xlu1 %245  ;;  %v1372_v15 = vpop.permute.xlu0 %1371 }
 0x344   : > { %1278 = vmatprep.subr.mxu0 %v1692_v33  ;;  %v408_v30 = vadd.f32 %v2693_v63, %v246_v51 }
 0x345   : > { %1279 = vmatpush2.msra.mxu0 %v2378_v28  ;;  %v2688_v28 = vld [vmem:[#allocation26_spill] sm:$0xff]  ;;  %v1224_v45 = vrot.slane %v1223_v8, 4 }
 0x346   : > { %1280 = vmatprep.subr.mxu0 %v1690_v58  ;;  %v1187_v58 = vrot.slane %v2471_v19, 4 }
 0x347   : > { %1281 = vmatpush2.msra.mxu0 %v2369_v48  ;;  %v2689_v48 = vld [vmem:[#allocation17_spill] sm:$0xff]  ;;  %v256_v18 = vpop.permute.xlu1 %255  ;;  %v1225_v20 = vadd.f32 %v1224_v45, %v1223_v8  ;;  %v1721_v45 = vld [vmem:[%s1788_s24 + $0x40] sm:$0xff] }
 0x348   : > { %1282 = vmatprep.subr.mxu0 %v1688_v57  ;;  %v402_v54 = vadd.f32 %v2690_v6, %v2689_v48  ;;  %v422_v41 = vadd.f32 %v2696_v42, %v256_v18  ;;  %v2705_v57 = vld [vmem:[#allocation15_spill] sm:$0xff]  ;;  %v1188_v33 = vadd.f32 %v1187_v58, %v2471_v19 }
 0x349   : > { %1283 = vmatpush2.msra.mxu0 %v2356_v4  ;;  %v2691_v4 = vld [vmem:[#allocation4_spill] sm:$0xff]  ;;  %v1226_v56 = vrot.slane %v1225_v20, 2  ;;  %v1714_v6 = vld [vmem:[%s1788_s24 + $0x8] sm:$0xff] }
 0x34a   : > { %1284 = vmatprep.subr.mxu0 %v1686_v36  ;;  %v410_v39 = vadd.f32 %v2691_v4, %v246_v51  ;;  %v2704_v36 = vld [vmem:[#allocation16_spill] sm:$0xff]  ;;  %v1189_v5 = vrot.slane %v1188_v33, 2 }
 0x34b   : > { %1285 = vmatpush2.msra.mxu0 %v2685_v29  ;;  %v266_v62 = vpop.permute.xlu1 %265  ;;  %v1227_v17 = vadd.f32 %v1226_v56, %v1225_v20  ;;  %v1713_v29 = vld [vmem:[%s1788_s24] sm:$0xff] }
 0x34c   : > { %1286 = vmatprep.subr.mxu0 %v2494_v12  ;;  %v2703_v12 = vld [vmem:[#allocation13_spill] sm:$0xff]  ;;  %v1190_v38 = vadd.f32 %v1189_v5, %v1188_v33 }
 0x34d   : > { %1287 = vmatpush2.msra.mxu0 %v2686_v3  ;;  %v438_v52 = vadd.f32 %v2703_v12, %v271_v37  ;;  %v1228_v44 = vrot.slane %v1227_v17, 1 }
 0x34e   : > { %1288 = vmatprep.subr.mxu0 %v2489_v14  ;;  %v432_v14 = vadd.f32 %v2701_v24, %v266_v62  ;;  %v1191_v13 = vrot.slane %v1190_v38, 1 }
 0x34f   : > { %1289 = vmatpush2.msra.mxu0 %v2687_v35  ;;  %v276_v9 = vpop.permute.xlu1 %275  ;;  %v1229_v60 = vadd.f32 %v1228_v44, %v1227_v17  ;;  %v1722_v17 = vld [vmem:[%s1788_s24 + $0x48] sm:$0xff] }
 0x350   : > { %1290 = vmatprep.subr.mxu0 %v2484_v1  ;;  %v2700_v1 = vld [vmem:[#allocation12_spill] sm:$0xff]  ;;  %v446_v43 = vadd.f32 %v2704_v36, %v276_v9  ;;  %v444_v40 = vadd.f32 %v2705_v57, %v276_v9  ;;  %v1192_v26 = vadd.f32 %v1191_v13, %v1190_v38  ;;  %v1720_v36 = vld [vmem:[%s1788_s24 + $0x38] sm:$0xff] }
 0x351   : > { %1291 = vmatpush2.msra.mxu0 %v2688_v28  ;;  %v434_v53 = vadd.f32 %v2700_v1, %v266_v62 }
 0x352   : > { %1292 = vmatprep.subr.mxu0 %v2475_v55  ;;  %v420_v55 = vadd.f32 %v2697_v31, %v256_v18  ;;  %1709 = vrcp.f32 %v1192_v26  ;;  %v1717_v31 = vld [vmem:[%s1788_s24 + $0x20] sm:$0xff] }
 0x353   : > { %1293 = vmatpush2.msra.mxu0 %v2692_v23  ;;  %1711 = vrcp.f32 %v1229_v60  ;;  %v1377_v28 = vpop.permute.xlu1 %1376 }
 0x354   : > { %1295 = vmatmul.mubr.f32.vlgmr.msra.gmra.mxu0 %v402_v54 }
 0x355   : > { %1300 = vmatprep.mubr.f32.mxu0 %v410_v39 }
 0x357   : > { %v1387_v62 = vpop.permute.xlu1 %1386 }
 0x358   : > { %1301 = vmatmul.mubr.f32.gmra.mxu0 %v408_v30 }
 0x359   : > { %1306 = vmatprep.mubr.f32.mxu0 %v416_v25  ;;  %v1382_v25 = vpop.permute.xlu0 %1381 }
 0x35b   : > { %v1397_v56 = vpop.permute.xlu1 %1396 }
 0x35c   : > { %1307 = vmatmul.mubr.f32.gmra.mxu0 %v414_v10 }
 0x35d   : > { %1312 = vmatprep.mubr.f32.mxu0 %v422_v41  ;;  %v1392_v12 = vpop.permute.xlu0 %1391 }
 0x35f   : > { %v2546_v46 = vpop.eup %1709 }
 0x360   : > { %1313 = vmatmul.mubr.f32.gmra.mxu0 %v420_v55  ;;  %v2549_v19 = vpop.eup %1711 }
 0x361   : > { %1318 = vmatprep.mubr.f32.mxu0 %v428_v16 }
 0x364   : > { %1319 = vmatmul.mubr.f32.gmra.mxu0 %v426_v2  ;;  %v1718_v2 = vld [vmem:[%s1788_s24 + $0x28] sm:$0xff] }
 0x365   : > { %1324 = vmatprep.mubr.f32.mxu0 %v434_v53 }
 0x368   : > { %1325 = vmatmul.mubr.f32.gmra.mxu0 %v432_v14  ;;  %v1719_v14 = vld [vmem:[%s1788_s24 + $0x30] sm:$0xff] }
 0x369   : > { %1330 = vmatprep.mubr.f32.mxu0 %v440_v49 }
 0x36c   : > { %1331 = vmatmul.mubr.f32.gmra.mxu0 %v438_v52 }
 0x36d   : > { %1336 = vmatprep.mubr.f32.mxu0 %v446_v43 }
 0x370   : > { %1337 = vmatmul.mubr.f32.gmra.mxu0 %v444_v40 }
 0x414   : > { %v1296_v59 = vpop.f32.mrf.mxu0 }
 0x415   : > { %v1345_v7 = vmul.f32 %v2546_v46, %v1296_v59  ;;  %v1723_v59 = vld [vmem:[%s1788_s24 + $0x50] sm:$0xff] }
 0x416   : > { %v1298_v22 = vpop.f32.mrf.mxu0 }
 0x417   : > { %v1409_v61 = vadd.f32 %v1372_v15, %v1345_v7  ;;  %v1346_v27 = vmul.f32 %v2549_v19, %v1298_v22 }
 0x418   : > { %v1302_v8 = vpop.f32.mrf.mxu0 }
 0x419   : > { %v1425_v3 = vadd.f32 %v1713_v29, %v1409_v61  ;;  %v1410_v35 = vadd.f32 %v1372_v15, %v1346_v27  ;;  %v1347_v51 = vmul.f32 %v2546_v46, %v1302_v8  ;;  %v1402_v61 = vpop.permute.xlu0 %1401  ;;  %v1724_v8 = vld [vmem:[%s1788_s24 + $0x58] sm:$0xff] }
 0x41a   : > { %v1304_v48 = vpop.f32.mrf.mxu0 }
 0x41b   : > { %1441 = vst [vmem:[%s2557_s20] sm:$0xff] %v1425_v3  ;;  %v1426_v54 = vadd.f32 %v1714_v6, %v1410_v35  ;;  %v1411_v4 = vadd.f32 %v1377_v28, %v1347_v51  ;;  %v1348_v39 = vmul.f32 %v2549_v19, %v1304_v48 }
 0x41c   : > { %v1308_v23 = vpop.f32.mrf.mxu0 }
 0x41d   : > { %1442 = vst [vmem:[%s2557_s20 + $0x8] sm:$0xff] %v1426_v54  ;;  %v1427_v63 = vadd.f32 %v1715_v50, %v1411_v4  ;;  %v1412_v30 = vadd.f32 %v1377_v28, %v1348_v39  ;;  %v1349_v47 = vmul.f32 %v2546_v46, %v1308_v23  ;;  %v1725_v28 = vld [vmem:[%s1788_s24 + $0x60] sm:$0xff]  ;;  %v1407_v4 = vpop.permute.xlu1 %1406  ;;  %v1726_v23 = vld [vmem:[%s1788_s24 + $0x68] sm:$0xff] }
 0x41e   : > { %v1310_v18 = vpop.f32.mrf.mxu0 }
 0x41f   : > { %1443 = vst [vmem:[%s2557_s20 + $0x10] sm:$0xff] %v1427_v63  ;;  %v1428_v10 = vadd.f32 %v1716_v21, %v1412_v30  ;;  %v1413_v42 = vadd.f32 %v1382_v25, %v1349_v47  ;;  %v1350_v41 = vmul.f32 %v2549_v19, %v1310_v18  ;;  %v1727_v47 = vld [vmem:[%s1788_s24 + $0x70] sm:$0xff]  ;;  %v1728_v21 = vld [vmem:[%s1788_s24 + $0x78] sm:$0xff] }
 0x420   : > { %v1314_v0 = vpop.f32.mrf.mxu0 }
 0x421   : > { %1444 = vst [vmem:[%s2557_s20 + $0x18] sm:$0xff] %v1428_v10  ;;  %v1429_v55 = vadd.f32 %v1717_v31, %v1413_v42  ;;  %v1414_v34 = vadd.f32 %v1382_v25, %v1350_v41  ;;  %v1351_v16 = vmul.f32 %v2546_v46, %v1314_v0 }
 0x422   : > { %v1316_v11 = vpop.f32.mrf.mxu0 }
 0x423   : > { %1445 = vst [vmem:[%s2557_s20 + $0x20] sm:$0xff] %v1429_v55  ;;  %v1430_v1 = vadd.f32 %v1718_v2, %v1414_v34  ;;  %v1415_v53 = vadd.f32 %v1387_v62, %v1351_v16  ;;  %v1352_v37 = vmul.f32 %v2549_v19, %v1316_v11 }
 0x424   : > { %v1320_v24 = vpop.f32.mrf.mxu0 }
 0x425   : > { %1446 = vst [vmem:[%s2557_s20 + $0x28] sm:$0xff] %v1430_v1  ;;  %v1431_v32 = vadd.f32 %v1719_v14, %v1415_v53  ;;  %v1416_v49 = vadd.f32 %v1387_v62, %v1352_v37  ;;  %v1353_v9 = vmul.f32 %v2546_v46, %v1320_v24 }
 0x426   : > { %v1322_v52 = vpop.f32.mrf.mxu0 }
 0x427   : > { %1447 = vst [vmem:[%s2557_s20 + $0x30] sm:$0xff] %v1431_v32  ;;  %v1432_v43 = vadd.f32 %v1720_v36, %v1416_v49  ;;  %v1417_v57 = vadd.f32 %v1392_v12, %v1353_v9  ;;  %v1354_v40 = vmul.f32 %v2549_v19, %v1322_v52 }
 0x428   : > { %v1326_v58 = vpop.f32.mrf.mxu0 }
 0x429   : > { %1448 = vst [vmem:[%s2557_s20 + $0x38] sm:$0xff] %v1432_v43  ;;  %v1433_v33 = vadd.f32 %v1721_v45, %v1417_v57  ;;  %v1418_v20 = vadd.f32 %v1392_v12, %v1354_v40  ;;  %v1355_v5 = vmul.f32 %v2546_v46, %v1326_v58 }
 0x42a   : > { %v1328_v38 = vpop.f32.mrf.mxu0 }
 0x42b   : > { %1449 = vst [vmem:[%s2557_s20 + $0x40] sm:$0xff] %v1433_v33  ;;  %v1434_v13 = vadd.f32 %v1722_v17, %v1418_v20  ;;  %v1419_v44 = vadd.f32 %v1397_v56, %v1355_v5  ;;  %v1356_v26 = vmul.f32 %v2549_v19, %v1328_v38 }
 0x42c   : > { %v1332_v60 = vpop.f32.mrf.mxu0 }
 0x42d   : > { %1450 = vst [vmem:[%s2557_s20 + $0x48] sm:$0xff] %v1434_v13  ;;  %v1435_v7 = vadd.f32 %v1723_v59, %v1419_v44  ;;  %v1420_v15 = vadd.f32 %v1397_v56, %v1356_v26  ;;  %v1357_v22 = vmul.f32 %v2546_v46, %v1332_v60 }
 0x42e   : > { %v1334_v27 = vpop.f32.mrf.mxu0 }
 0x42f   : > { %1451 = vst [vmem:[%s2557_s20 + $0x50] sm:$0xff] %v1435_v7  ;;  %v1436_v29 = vadd.f32 %v1724_v8, %v1420_v15  ;;  %v1421_v3 = vadd.f32 %v1402_v61, %v1357_v22  ;;  %v1358_v35 = vmul.f32 %v2549_v19, %v1334_v27 }
 0x430   : > { %v1338_v51 = vpop.f32.mrf.mxu0 }
 0x431   : > { %1452 = vst [vmem:[%s2557_s20 + $0x58] sm:$0xff] %v1436_v29  ;;  %v1437_v48 = vadd.f32 %v1725_v28, %v1421_v3  ;;  %v1422_v6 = vadd.f32 %v1402_v61, %v1358_v35  ;;  %v1359_v54 = vmul.f32 %v2546_v46, %v1338_v51 }
 0x432   : > { %v1340_v39 = vpop.f32.mrf.mxu0 }
 0x433   : > { %1453 = vst [vmem:[%s2557_s20 + $0x60] sm:$0xff] %v1437_v48  ;;  %v1438_v50 = vadd.f32 %v1726_v23, %v1422_v6  ;;  %v1423_v63 = vadd.f32 %v1407_v4, %v1359_v54  ;;  %v1360_v30 = vmul.f32 %v2549_v19, %v1340_v39 }
 0x435   : > { %1454 = vst [vmem:[%s2557_s20 + $0x68] sm:$0xff] %v1438_v50  ;;  %v1439_v25 = vadd.f32 %v1727_v47, %v1423_v63  ;;  %v1424_v18 = vadd.f32 %v1407_v4, %v1360_v30 }
 0x437   : > { %1455 = vst [vmem:[%s2557_s20 + $0x70] sm:$0xff] %v1439_v25  ;;  %v1440_v10 = vadd.f32 %v1728_v21, %v1424_v18 }
 0x439   : > { %1456 = vst [vmem:[%s2557_s20 + $0x78] sm:$0xff] %v1440_v10 }
 0x43a PF: > { %s14_s15 = sadd.s32 1, %s1735_s15  }
 0x43b   : > { %p11_p4 = scmp.ge.s32.totalorder %s14_s15, 4  }
 0x43d   :  { %13 = sbr.rel (!%p11_p4) target bundleno = 1 (0x1), region = 66 }

</bundles_post_ra>
